<compile_context>
chip_gen: v5e
topology: v5e:2x2
jax: 0.10.0
libtpu: 0.0.40
codegen_flags: <defaults>
</compile_context>

<pallas_src>
import functools

import numpy as np
import jax
import jax.numpy as jnp
from jax.experimental import pallas as pl
from jax.experimental.pallas import tpu as pltpu


def _round_up(x, m):
    return ((x + m - 1) // m) * m


def _pick_tile_m(n_rows, requested, min_steps=2):
    """Sublane-aligned row tile: as big as requested, never larger than the
    array extent, and small enough to keep >= min_steps grid steps on the
    parallel axis (so v7x's two TensorCores both get work)."""
    if n_rows <= 8 or (requested >= n_rows and min_steps <= 1):
        return n_rows                          # single full-extent block
    tm = min(requested, n_rows)
    tm = max(8, (tm // 8) * 8)                 # multiple of 8, <= n_rows
    while pl.cdiv(n_rows, tm) < min_steps and tm > 8:
        tm = max(8, ((tm // 2) // 8) * 8)
    return tm


# ----------------------------------------------------------------------------
# Kernels
# ----------------------------------------------------------------------------

def _adaln_token_kernel(x_ref, c_ref, w_ref, b_ref, o_ref, *, d, eps,
                        compute_dtype):
    """Per-token conditioning: fused [tm, C] @ [C, 2D] projection + LayerNorm.

    The LayerNorm affine is already folded into w/b at prep time, so the body
    is out = gamma' * xhat + beta' with xhat the raw normalized x.
    """
    # 1) Fused conditioning projection on the MXU (gamma'||beta' in one dot).
    #    Condition is cast to the MXU compute dtype here in VMEM -- no extra
    #    HBM pass in the wrapper. Accumulation stays f32.
    c = c_ref[...].astype(compute_dtype)
    gb = jnp.dot(c, w_ref[...], preferred_element_type=jnp.float32)
    gb = gb + b_ref[...]
    gamma = gb[:, :d]                 # lane-aligned split when D % 128 == 0
    beta = gb[:, d:]

    # 2) LayerNorm statistics in f32 (biased variance, matches nn.LayerNorm).
    x = x_ref[...].astype(jnp.float32)
    mean = jnp.mean(x, axis=-1, keepdims=True)
    var = jnp.mean(jnp.square(x - mean), axis=-1, keepdims=True)
    xhat = (x - mean) * jax.lax.rsqrt(var + eps)

    # 3) Adaptive modulation (LN affine folded into gamma'/beta').
    o_ref[...] = (gamma * xhat + beta).astype(o_ref.dtype)


def _adaln_batch_kernel(x_ref, gb_ref, o_ref, *, d, eps):
    """Per-batch conditioning: gamma'/beta' ([1, 1, 2D], f32) already projected
    outside the kernel; broadcast over the seq tile inside the kernel."""
    gb = gb_ref[...]
    gamma = gb[..., :d]
    beta = gb[..., d:]

    x = x_ref[...].astype(jnp.float32)
    mean = jnp.mean(x, axis=-1, keepdims=True)
    var = jnp.mean(jnp.square(x - mean), axis=-1, keepdims=True)
    xhat = (x - mean) * jax.lax.rsqrt(var + eps)

    o_ref[...] = (gamma * xhat + beta).astype(o_ref.dtype)


# ----------------------------------------------------------------------------
# Wrapper
# ----------------------------------------------------------------------------

def _fold_params(params):
    """Fold the LayerNorm affine into the gamma/beta projections (exact f32
    identity, done once):
        out = gamma*(xhat*ln_w + ln_b) + beta
            = (gamma*ln_w)*xhat + (gamma*ln_b + beta)
    """
    f32 = jnp.float32
    gw, bw = params["gamma_w"].astype(f32), params["beta_w"].astype(f32)
    gb, bb = params["gamma_b"].astype(f32), params["beta_b"].astype(f32)
    lw, lb = params["ln_w"].astype(f32), params["ln_b"].astype(f32)
    w_gamma = gw * lw[None, :]
    w_beta = bw + gw * lb[None, :]
    b_gamma = gb * lw
    b_beta = bb + gb * lb
    fused_w = jnp.concatenate([w_gamma, w_beta], axis=1)     # [C, 2D]
    fused_b = jnp.concatenate([b_gamma, b_beta], axis=0)     # [2D]
    return fused_w, fused_b


def ada_layer_norm(x, condition, params, *, tile_m=512, eps=1e-5,
                   compute_dtype=jnp.bfloat16, out_dtype=None):
    """AdaLayerNorm forward.

    x:         [B, S, D]
    condition: [B, S, C]  (per-token, as used inside DisMix's DiT) or
               [B, C]     (per-batch, the module's documented signature;
                           broadcast over seq_len).
    params:    gamma_w/beta_w [C, D] (transposed vs torch's [D, C]),
               gamma_b/beta_b [D], ln_w/ln_b [D]
    returns:   [B, S, D] in out_dtype (defaults to x.dtype).
    """
    B, S, D = x.shape
    C = condition.shape[-1]
    out_dtype = x.dtype if out_dtype is None else out_dtype

    fused_w, fused_b = _fold_params(params)

    if condition.ndim == 3:
        # --- per-token conditioning: fuse the projection into the kernel ----
        M = B * S
        tm = _pick_tile_m(M, tile_m, min_steps=2)
        x2d = x.reshape(M, D)                    # free reshape, no HBM copy
        c2d = condition.reshape(M, C)            # free reshape, no HBM copy
        w = fused_w.astype(compute_dtype)        # [C, 2D] weight, VMEM-resident
        b = fused_b.reshape(1, 2 * D)            # [1, 2D] f32

        out = pl.pallas_call(
            functools.partial(_adaln_token_kernel, d=D, eps=eps,
                              compute_dtype=compute_dtype),
            out_shape=jax.ShapeDtypeStruct((M, D), out_dtype),
            grid=(pl.cdiv(M, tm),),              # ragged last block is masked
            in_specs=[
                pl.BlockSpec((tm, D), lambda i: (i, 0)),     # x tokens
                pl.BlockSpec((tm, C), lambda i: (i, 0)),     # condition tokens
                pl.BlockSpec((C, 2 * D), lambda i: (0, 0)),  # fused gamma'||beta' W
                pl.BlockSpec((1, 2 * D), lambda i: (0, 0)),  # fused bias
            ],
            out_specs=pl.BlockSpec((tm, D), lambda i: (i, 0)),
            compiler_params=pltpu.CompilerParams(
                dimension_semantics=("parallel",)),
        )(x2d, c2d, w, b)
        return out.reshape(B, S, D)

    # --- per-batch conditioning ([B, C]) -------------------------------------
    # TODO(synk): PyTorch broadcasting of [B, D] gamma against [B, S, D] is
    # only valid when B == 1 or B == S; here [B, C] is interpreted as per-batch
    # conditioning broadcast over seq_len (the intended usage).
    # The projection is a tiny [B, C] @ [C, 2D] matmul -- do it once in f32
    # instead of materializing a [B, S, C] broadcast in HBM.
    gb_rows = condition.astype(jnp.float32) @ fused_w + fused_b       # [B, 2D]
    gb_rows = gb_rows.reshape(B, 1, 2 * D)

    tm = _pick_tile_m(S, tile_m, min_steps=2 if B == 1 else 1)
    out = pl.pallas_call(
        functools.partial(_adaln_batch_kernel, d=D, eps=eps),
        out_shape=jax.ShapeDtypeStruct((B, S, D), out_dtype),
        grid=(B, pl.cdiv(S, tm)),
        in_specs=[
            pl.BlockSpec((1, tm, D), lambda b, s: (b, s, 0)),       # x seq tile
            pl.BlockSpec((1, 1, 2 * D), lambda b, s: (b, 0, 0)),    # batch gamma'||beta'
        ],
        out_specs=pl.BlockSpec((1, tm, D), lambda b, s: (b, s, 0)),
        compiler_params=pltpu.CompilerParams(
            dimension_semantics=("parallel", "parallel")),
    )(x, gb_rows)
    return out


# ----------------------------------------------------------------------------
# Pure-JAX reference (mirrors the PyTorch module, f32)
# ----------------------------------------------------------------------------

def ada_layer_norm_ref(x, condition, params, eps=1e-5):
    if condition.ndim == 2:
        condition = condition[:, None, :]
    mean = jnp.mean(x, axis=-1, keepdims=True)
    var = jnp.mean(jnp.square(x - mean), axis=-1, keepdims=True)
    xn = (x - mean) / jnp.sqrt(var + eps)
    xn = xn * params["ln_w"] + params["ln_b"]
    gamma = condition @ params["gamma_w"] + params["gamma_b"]
    beta = condition @ params["beta_w"] + params["beta_b"]
    return gamma * xn + beta


# ----------------------------------------------------------------------------

if __name__ == "__main__":
    key = jax.random.PRNGKey(0)
    kx, kc3, kc2, kgw, kgb, kbw, kbb, klw, klb = jax.random.split(key, 9)

    # Small shapes consistent with the module: B=2, S=100 tokens, D=256, C=512.
    B, S, D, C = 2, 100, 256, 512
    x = jax.random.normal(kx, (B, S, D), jnp.float32)
    cond_tok = jax.random.normal(kc3, (B, S, C), jnp.float32)   # per-token (DiT)
    cond_bat = jax.random.normal(kc2, (B, C), jnp.float32)      # module signature

    params = {
        "gamma_w": jax.random.normal(kgw, (C, D), jnp.float32) * 0.02,
        "gamma_b": jax.random.normal(kgb, (D,), jnp.float32) * 0.02,
        "beta_w":  jax.random.normal(kbw, (C, D), jnp.float32) * 0.02,
        "beta_b":  jax.random.normal(kbb, (D,), jnp.float32) * 0.02,
        # nn.LayerNorm affine params (ones/zeros at init; perturbed here to
        # exercise the folded-affine path like a trained model would).
        "ln_w": 1.0 + 0.1 * jax.random.normal(klw, (D,), jnp.float32),
        "ln_b": 0.1 * jax.random.normal(klb, (D,), jnp.float32),
    }

    fwd = jax.jit(ada_layer_norm)

    # Path 1: per-token conditioning (fused bf16 MXU projection in-kernel).
    out_tok = jax.block_until_ready(fwd(x, cond_tok, params))
    ref_tok = ada_layer_norm_ref(x, cond_tok, params)
    assert out_tok.shape == (B, S, D) and out_tok.dtype == x.dtype
    # bf16 matmul operands with f32 accumulation: loose-but-tight tolerance.
    np.testing.assert_allclose(np.asarray(out_tok), np.asarray(ref_tok),
                               rtol=2e-2, atol=2e-2)

    # Path 2: per-batch conditioning ([B, C], the module's documented forward).
    out_bat = jax.block_until_ready(fwd(x, cond_bat, params))
    ref_bat = ada_layer_norm_ref(x, cond_bat, params)
    assert out_bat.shape == (B, S, D) and out_bat.dtype == x.dtype
    np.testing.assert_allclose(np.asarray(out_bat), np.asarray(ref_bat),
                               rtol=1e-3, atol=1e-3)

    print("KERNEL_OK")
</pallas_src>

<mosaic_0001>
module attributes {stable_mosaic.version = 11 : i64} {
  func.func @_adaln_token_kernel(%arg0: i32, %arg1: memref<96x256xf32, #tpu.memory_space<vmem>>, %arg2: memref<96x512xf32, #tpu.memory_space<vmem>>, %arg3: memref<512x512xbf16, #tpu.memory_space<vmem>>, %arg4: memref<1x512xf32, #tpu.memory_space<vmem>>, %arg5: memref<96x256xf32, #tpu.memory_space<vmem>>) attributes {dimension_semantics = [#tpu.dimension_semantics<parallel>], iteration_bounds = array<i64: 3>, scalar_prefetch = 0 : i64, scratch_operands = 0 : i64, tpu.core_type = #tpu.core_type<tc>, window_params = [{transform_indices = @transform_0, window_bounds = array<i64: 96, 256>}, {transform_indices = @transform_1, window_bounds = array<i64: 96, 512>}, {pipeline_mode = #tpu.pipeline_mode<synchronous>, transform_indices = @transform_2, window_bounds = array<i64: 512, 512>}, {pipeline_mode = #tpu.pipeline_mode<synchronous>, transform_indices = @transform_3, window_bounds = array<i64: 1, 512>}, {transform_indices = @transform_4, window_bounds = array<i64: 96, 256>}]} {
    %c0 = arith.constant 0 : index
    %c0_0 = arith.constant 0 : index
    %0 = vector.load %arg2[%c0, %c0_0] : memref<96x512xf32, #tpu.memory_space<vmem>>, vector<96x512xf32>
    %1 = arith.truncf %0 : vector<96x512xf32> to vector<96x512xbf16>
    %c0_1 = arith.constant 0 : index
    %c0_2 = arith.constant 0 : index
    %2 = vector.load %arg3[%c0_1, %c0_2] : memref<512x512xbf16, #tpu.memory_space<vmem>>, vector<512x512xbf16>
    %cst = arith.constant dense<0.000000e+00> : vector<96x512xf32>
    %3 = tpu.matmul %1, %2, %cst {dimension_numbers = #tpu.dot_dimension_numbers<[1], [0], [0], [1], [0, 0, 1, 1], [], []>} : vector<96x512xbf16>, vector<512x512xbf16>, vector<96x512xf32> -> vector<96x512xf32>
    %c0_3 = arith.constant 0 : index
    %c0_4 = arith.constant 0 : index
    %4 = vector.load %arg4[%c0_3, %c0_4] : memref<1x512xf32, #tpu.memory_space<vmem>>, vector<1x512xf32>
    %5 = vector.broadcast %4 : vector<1x512xf32> to vector<96x512xf32>
    %6 = arith.addf %3, %5 : vector<96x512xf32>
    %7 = vector.extract_strided_slice %6 {offsets = [0, 0], sizes = [96, 256], strides = [1, 1]} : vector<96x512xf32> to vector<96x256xf32>
    %8 = vector.extract_strided_slice %6 {offsets = [0, 256], sizes = [96, 256], strides = [1, 1]} : vector<96x512xf32> to vector<96x256xf32>
    %c0_5 = arith.constant 0 : index
    %c0_6 = arith.constant 0 : index
    %9 = vector.load %arg1[%c0_5, %c0_6] : memref<96x256xf32, #tpu.memory_space<vmem>>, vector<96x256xf32>
    %cst_7 = arith.constant dense<0.000000e+00> : vector<96xf32>
    %10 = vector.multi_reduction <add>, %9, %cst_7 [1] : vector<96x256xf32> to vector<96xf32>
    %11 = vector.shape_cast %10 : vector<96xf32> to vector<96x1xf32>
    %cst_8 = arith.constant 2.560000e+02 : f32
    %12 = vector.broadcast %cst_8 : f32 to vector<96x1xf32>
    %13 = arith.divf %11, %12 : vector<96x1xf32>
    %14 = vector.broadcast %13 : vector<96x1xf32> to vector<96x256xf32>
    %15 = arith.subf %9, %14 : vector<96x256xf32>
    %16 = arith.mulf %15, %15 : vector<96x256xf32>
    %cst_9 = arith.constant dense<0.000000e+00> : vector<96xf32>
    %17 = vector.multi_reduction <add>, %16, %cst_9 [1] : vector<96x256xf32> to vector<96xf32>
    %18 = vector.shape_cast %17 : vector<96xf32> to vector<96x1xf32>
    %cst_10 = arith.constant 2.560000e+02 : f32
    %19 = vector.broadcast %cst_10 : f32 to vector<96x1xf32>
    %20 = arith.divf %18, %19 : vector<96x1xf32>
    %21 = vector.broadcast %13 : vector<96x1xf32> to vector<96x256xf32>
    %22 = arith.subf %9, %21 : vector<96x256xf32>
    %cst_11 = arith.constant 9.99999974E-6 : f32
    %23 = vector.broadcast %cst_11 : f32 to vector<96x1xf32>
    %24 = arith.addf %20, %23 : vector<96x1xf32>
    %25 = math.rsqrt %24 : vector<96x1xf32>
    %26 = vector.broadcast %25 : vector<96x1xf32> to vector<96x256xf32>
    %27 = arith.mulf %22, %26 : vector<96x256xf32>
    %28 = arith.mulf %7, %27 : vector<96x256xf32>
    %29 = arith.addf %28, %8 : vector<96x256xf32>
    %c0_12 = arith.constant 0 : index
    %c0_13 = arith.constant 0 : index
    %30 = vector.load %arg5[%c0_12, %c0_13] : memref<96x256xf32, #tpu.memory_space<vmem>>, vector<96x256xf32>
    tpu.vector_store %arg5[%c0_12, %c0_13], %29 {strides = array<i32>} : memref<96x256xf32, #tpu.memory_space<vmem>>, vector<96x256xf32>,
    return
  }
  func.func @transform_0(%arg0: i32) -> (i32, i32) {
    %c0_i32 = arith.constant 0 : i32
    %c0_i32_0 = arith.constant 0 : i32
    return %arg0, %c0_i32 : i32, i32
  }
  func.func @transform_1(%arg0: i32) -> (i32, i32) {
    %c0_i32 = arith.constant 0 : i32
    %c0_i32_0 = arith.constant 0 : i32
    return %arg0, %c0_i32 : i32, i32
  }
  func.func @transform_2(%arg0: i32) -> (i32, i32) {
    %c0_i32 = arith.constant 0 : i32
    %c0_i32_0 = arith.constant 0 : i32
    %c0_i32_1 = arith.constant 0 : i32
    return %c0_i32, %c0_i32_0 : i32, i32
  }
  func.func @transform_3(%arg0: i32) -> (i32, i32) {
    %c0_i32 = arith.constant 0 : i32
    %c0_i32_0 = arith.constant 0 : i32
    %c0_i32_1 = arith.constant 0 : i32
    return %c0_i32, %c0_i32_0 : i32, i32
  }
  func.func @transform_4(%arg0: i32) -> (i32, i32) {
    %c0_i32 = arith.constant 0 : i32
    %c0_i32_0 = arith.constant 0 : i32
    return %arg0, %c0_i32 : i32, i32
  }
}

</mosaic_0001>

<bundles_post_ra>
// kernel: ada_layer_norm.1
= control target key start
LH: loop header
LB: loop body
LE: loop exit
PB: predicated region body
PF: predicated region fallthrough
CT: control target
= control target key end

     0   :  { %s3278_s15 = smov 0   ;;  %s3280_s16 = smov 0   ;;  %s5098_s0 = inlined_call_operand.vmem [shape: f32[200,256], index: 0, kind: input, shape index: {}]   ;;  %s5099_s1 = inlined_call_operand.vmem [shape: f32[200,512], index: 1, kind: input, shape index: {}]   ;;  %s5100_s2 = inlined_call_operand.vmem [shape: bf16[512,512], index: 2, kind: input, shape index: {}]   ;;  %s5101_s3 = inlined_call_operand.vmem [shape: f32[1,512], index: 3, kind: input, shape index: {}]   ;;  %s5102_s4 = inlined_call_operand.vmem [shape: f32[200,256], index: 4, kind: output, shape index: {}]  }
   0x1   :  { %s3282_s17 = smov 0  }
   0x2 LB: > { %s3291_s18 = sadd.s32 4294967295, %s3218_s17   ;;  %s3293_s19 = sadd.s32 1, %s3218_s17   ;;  %s3218_s17 = sphi %s3282_s17, %s5230_s17   ;;  %s3214_s16 = sphi %s3280_s16, %s5229_s16   ;;  %s3210_s15 = sphi %s3278_s15, %s5228_s15  }
   0x3   : > { %s112_s20 = ssub.s32 %s3218_s17, %s3293_s19  ;;  %s115_s21 = sadd.s32 1, %s3214_s16 }
   0x4   : > { %p113_p0 = scmp.eq.s32.totalorder %s112_s20, 0  ;;  %p125_p1 = scmp.ne.s32.totalorder %s3214_s16, %s3210_s15 }
   0x5   : > { %p126_p2 = scmp.eq.s32.totalorder %s3291_s18, 2  ;;  %p2375_p3 = scmp.ge.s32.totalorder %s3218_s17, 1 }
   0x6   : > { %s3301_s22 = scalar_select %p113_p0, %s3214_s16, %s115_s21  }
   0x7   : > { %p3303_p4 = por %p126_p2, %p125_p1  ;;  %p196_p5 = scmp.lt.s32.totalorder %s3218_s17, 4 }
   0x9   : > { %p197_p6 = pnand %p2375_p3, %p196_p5 }
   0xb   : > { %200 = sbr.rel (%p197_p6) target bundleno = 644 (0x284), region = 36 }
  0x10   : > { %v2494_v0 = vld [vmem:[%s5100_s2 + $0xe0] sm:$0xf]  ;;  %v2938_v1 = vld [vmem:[%s5100_s2 + $0xec] sm:$0xf0]  ;;  %s3380_s6 = smul.u32 12, %s3291_s18  ;;  %s235_s7 = sand.u32 1, %s3210_s15  }
  0x11   : > { %v2622_v2 = vld [vmem:[%s5100_s2 + $0x1e0] sm:$0xf]  ;;  %v2495_v3 = vor.u32 %v2938_v1, %v2494_v0  ;;  %v2970_v4 = vld [vmem:[%s5100_s2 + $0x1ec] sm:$0xf0]  ;;  %s3039_s10 = smul.u32 (%p3303_p4), 192, %s3291_s18 }
  0x12   : > { %v2750_v5 = vld [vmem:[%s5100_s2 + $0x2e0] sm:$0xf]  ;;  %v3002_v6 = vld [vmem:[%s5100_s2 + $0x2ec] sm:$0xf0]  ;;  %v2623_v7 = vor.u32 %v2970_v4, %v2622_v2  ;;  %p244_p7 = scmp.lt.s32.totalorder %s3380_s6, 24  ;;  %s2163_s8 = ssub.s32 (%p3303_p4), 25, %s3380_s6 }
  0x13   : > { %v2751_v8 = vor.u32 %v3002_v6, %v2750_v5  ;;  %v2878_v9 = vld [vmem:[%s5100_s2 + $0x3e0] sm:$0xf]  ;;  %v3034_v10 = vld [vmem:[%s5100_s2 + $0x3ec] sm:$0xf0]  ;;  %1128 = vmatpush.bf16.msra.mxu0 %v2495_v3  ;;  %p2164_p8 = scmp.lt.s32.totalorder (%p3303_p4), %s2163_s8, 12  ;;  %s4976_s13 = scalar_lea.vmem (%p3303_p4), %s5102_s4, %s3039_s10  }
  0x14   : > { %v2478_v11 = vld [vmem:[%s5100_s2 + $0xc0] sm:$0xf]  ;;  %v2879_v12 = vor.u32 %v3034_v10, %v2878_v9  ;;  %v2934_v13 = vld [vmem:[%s5100_s2 + $0xcc] sm:$0xf0]  ;;  %1167 = vmatpush.bf16.msra.mxu1 %v2623_v7  ;;  %s3408_s29 = scalar_select %p244_p7, %s3380_s6, 24 }
  0x15   : > { %v2606_v14 = vld [vmem:[%s5100_s2 + $0x1c0] sm:$0xf]  ;;  %v2966_v15 = vld [vmem:[%s5100_s2 + $0x1cc] sm:$0xf0]  ;;  %1206 = vmatpush.bf16.msra.mxu2 %v2751_v8  ;;  %v2479_v16 = vor.u32 %v2934_v13, %v2478_v11 }
  0x16   : > { %v2607_v17 = vor.u32 %v2966_v15, %v2606_v14  ;;  %v2734_v18 = vld [vmem:[%s5100_s2 + $0x2c0] sm:$0xf]  ;;  %v2998_v19 = vld [vmem:[%s5100_s2 + $0x2cc] sm:$0xf0]  ;;  %1245 = vmatpush.bf16.msra.mxu3 %v2879_v12  ;;  %s2906_s17 = sshll.u32 %s3408_s29, 4 }
  0x17   : > { %v2862_v20 = vld [vmem:[%s5100_s2 + $0x3c0] sm:$0xf]  ;;  %v2735_v21 = vor.u32 %v2998_v19, %v2734_v18  ;;  %v3030_v22 = vld [vmem:[%s5100_s2 + $0x3cc] sm:$0xf0]  ;;  %1129 = vmatpush.bf16.msra.mxu0 %v2479_v16  ;;  %s3435_s28 = scalar_lea.vmem %s5098_s0, %s2906_s17  ;;  %s2907_s17 = sshll.u32 %s3408_s29, 5 }
  0x18   : > { %v2462_v23 = vld [vmem:[%s5100_s2 + $0xa0] sm:$0xf]  ;;  %v2930_v24 = vld [vmem:[%s5100_s2 + $0xac] sm:$0xf0]  ;;  %v2863_v25 = vor.u32 %v3030_v22, %v2862_v20  ;;  %1168 = vmatpush.bf16.msra.mxu1 %v2607_v17  ;;  %v3450_v60 = vld [vmem:[%s3435_s28 + $0x48] sm:$0xff]  ;;  %s3542_s9 = scalar_lea.vmem %s5099_s1, %s2907_s17 }
  0x19   : > { %v2590_v26 = vld [vmem:[%s5100_s2 + $0x1a0] sm:$0xf]  ;;  %v2962_v27 = vld [vmem:[%s5100_s2 + $0x1ac] sm:$0xf0]  ;;  %v2463_v29 = vor.u32 %v2930_v24, %v2462_v23  ;;  %1207 = vmatpush.bf16.msra.mxu2 %v2735_v21  ;;  %v3461_v0 = vld [vmem:[%s3435_s28 + $0x28] sm:$0xff] }
  0x1a   : > { %v2718_v28 = vld [vmem:[%s5100_s2 + $0x2a0] sm:$0xf]  ;;  %v2994_v30 = vld [vmem:[%s5100_s2 + $0x2ac] sm:$0xf0]  ;;  %v2591_v33 = vor.u32 %v2962_v27, %v2590_v26  ;;  %1246 = vmatpush.bf16.msra.mxu3 %v2863_v25  ;;  %v3467_v2 = vld [vmem:[%s3435_s28 + $0x8] sm:$0xff] }
  0x1b   : > { %v2846_v31 = vld [vmem:[%s5100_s2 + $0x3a0] sm:$0xf]  ;;  %v3026_v32 = vld [vmem:[%s5100_s2 + $0x3ac] sm:$0xf0]  ;;  %v2719_v34 = vor.u32 %v2994_v30, %v2718_v28  ;;  %1130 = vmatpush.bf16.msra.mxu0 %v2463_v29  ;;  %v3477_v9 = vld [vmem:[%s3435_s28 + $0x58] sm:$0xff] }
  0x1c   : > { %v2446_v35 = vld [vmem:[%s5100_s2 + $0x80] sm:$0xf]  ;;  %v2926_v36 = vld [vmem:[%s5100_s2 + $0x8c] sm:$0xf0]  ;;  %v2847_v37 = vor.u32 %v3026_v32, %v2846_v31  ;;  %1169 = vmatpush.bf16.msra.mxu1 %v2591_v33  ;;  %v3487_v12 = vld [vmem:[%s3435_s28 + $0x38] sm:$0xff] }
  0x1d   : > { %v2574_v38 = vld [vmem:[%s5100_s2 + $0x180] sm:$0xf]  ;;  %v2958_v39 = vld [vmem:[%s5100_s2 + $0x18c] sm:$0xf0]  ;;  %v2447_v43 = vor.u32 %v2926_v36, %v2446_v35  ;;  %1208 = vmatpush.bf16.msra.mxu2 %v2719_v34  ;;  %v3493_v14 = vld [vmem:[%s3435_s28 + $0x18] sm:$0xff] }
  0x1e   : > { %v2702_v40 = vld [vmem:[%s5100_s2 + $0x280] sm:$0xf]  ;;  %v2990_v41 = vld [vmem:[%s5100_s2 + $0x28c] sm:$0xf0]  ;;  %v2575_v45 = vor.u32 %v2958_v39, %v2574_v38  ;;  %1247 = vmatpush.bf16.msra.mxu3 %v2847_v37 }
  0x1f   : > { %v2830_v42 = vld [vmem:[%s5100_s2 + $0x380] sm:$0xf]  ;;  %v3022_v44 = vld [vmem:[%s5100_s2 + $0x38c] sm:$0xf0]  ;;  %v2703_v46 = vor.u32 %v2990_v41, %v2702_v40  ;;  %1131 = vmatpush.bf16.msra.mxu0 %v2447_v43  ;;  %v3554_v41 = vld [vmem:[%s3435_s28 + $0x88] sm:$0xff] }
  0x20   : > { %v2430_v47 = vld [vmem:[%s5100_s2 + $0x60] sm:$0xf]  ;;  %v2922_v48 = vld [vmem:[%s5100_s2 + $0x6c] sm:$0xf0]  ;;  %v2831_v49 = vor.u32 %v3022_v44, %v2830_v42  ;;  %1170 = vmatpush.bf16.msra.mxu1 %v2575_v45 }
  0x21   : > { %v2558_v50 = vld [vmem:[%s5100_s2 + $0x160] sm:$0xf]  ;;  %v2954_v51 = vld [vmem:[%s5100_s2 + $0x16c] sm:$0xf0]  ;;  %v2431_v55 = vor.u32 %v2922_v48, %v2430_v47  ;;  %1209 = vmatpush.bf16.msra.mxu2 %v2703_v46  ;;  %v3569_v46 = vld [vmem:[%s3435_s28 + $0x68] sm:$0xff] }
  0x22   : > { %v2686_v52 = vld [vmem:[%s5100_s2 + $0x260] sm:$0xf]  ;;  %v2986_v53 = vld [vmem:[%s5100_s2 + $0x26c] sm:$0xf0]  ;;  %1248 = vmatpush.bf16.msra.mxu3 %v2831_v49  ;;  %v2559_v3 = vor.u32 %v2954_v51, %v2558_v50 }
  0x23   : > { %v2814_v54 = vld [vmem:[%s5100_s2 + $0x360] sm:$0xf]  ;;  %v3018_v56 = vld [vmem:[%s5100_s2 + $0x36c] sm:$0xf0]  ;;  %v2687_v4 = vor.u32 %v2986_v53, %v2686_v52  ;;  %1132 = vmatpush.bf16.msra.mxu0 %v2431_v55  ;;  %v279_v53 = vld [vmem:[%s3542_s9 + $0x8] sm:$0xff] }
  0x24   : > { %v2414_v57 = vld [vmem:[%s5100_s2 + $0x40] sm:$0xf]  ;;  %v2918_v58 = vld [vmem:[%s5100_s2 + $0x4c] sm:$0xf0]  ;;  %v2815_v7 = vor.u32 %v3018_v56, %v2814_v54  ;;  %1171 = vmatpush.bf16.msra.mxu1 %v2559_v3  ;;  %v283_v56 = vld [vmem:[%s3542_s9 + $0x28] sm:$0xff] }
  0x25   : > { %v3447_v59 = vld [vmem:[%s3435_s28 + $0x40] sm:$0xff]  ;;  %v3474_v8 = vld [vmem:[%s3435_s28 + $0x50] sm:$0xff]  ;;  %v2415_v15 = vor.u32 %v2918_v58, %v2414_v57  ;;  %1210 = vmatpush.bf16.msra.mxu2 %v2687_v4  ;;  %v281_v3 = vld [vmem:[%s3542_s9 + $0x18] sm:$0xff] }
  0x26   : > { %v3453_v61 = vld [vmem:[%s3435_s28 + $0x20] sm:$0xff]  ;;  %v1788_v63 = vadd.f32 %v3450_v60, %v3447_v59  ;;  %v2950_v10 = vld [vmem:[%s5100_s2 + $0x14c] sm:$0xf0]  ;;  %1249 = vmatpush.bf16.msra.mxu3 %v2815_v7  ;;  %v1791_v28 = vadd.f32 %v3477_v9, %v3474_v8  ;;  %v285_v4 = vld [vmem:[%s3542_s9 + $0x38] sm:$0xff] }
  0x27   : > { %v2542_v62 = vld [vmem:[%s5100_s2 + $0x140] sm:$0xf]  ;;  %v1782_v5 = vadd.f32 %v3461_v0, %v3453_v61  ;;  %v3484_v11 = vld [vmem:[%s3435_s28 + $0x30] sm:$0xff]  ;;  %1133 = vmatpush.bf16.msra.mxu0 %v2415_v15  ;;  %v3600_v15 = vpack.c.bf16 %v283_v56, %v279_v53  ;;  %v2992_v56 = vld [vmem:[%s5100_s2 + $0x2a4] sm:$0xf] }
  0x28   : > { %v3464_v1 = vld [vmem:[%s3435_s28] sm:$0xff]  ;;  %1789 = vadd.xlane.f32.xlu2 %v1788_v63  ;;  %v3490_v13 = vld [vmem:[%s3435_s28 + $0x10] sm:$0xff]  ;;  %v2543_v19 = vor.u32 %v2950_v10, %v2542_v62  ;;  %v1785_v33 = vadd.f32 %v3487_v12, %v3484_v11 }
  0x29   : > { %v1776_v6 = vadd.f32 %v3467_v2, %v3464_v1  ;;  %1783 = vadd.xlane.f32.xlu1 %v1782_v5  ;;  %v2670_v16 = vld [vmem:[%s5100_s2 + $0x240] sm:$0xf]  ;;  %v2982_v17 = vld [vmem:[%s5100_s2 + $0x24c] sm:$0xf0]  ;;  %v1779_v34 = vadd.f32 %v3493_v14, %v3490_v13  ;;  %v3000_v5 = vld [vmem:[%s5100_s2 + $0x2e4] sm:$0xf] }
  0x2a   : > { %v2798_v18 = vld [vmem:[%s5100_s2 + $0x340] sm:$0xf]  ;;  %v2671_v20 = vor.u32 %v2982_v17, %v2670_v16  ;;  %v3014_v21 = vld [vmem:[%s5100_s2 + $0x34c] sm:$0xf0]  ;;  %1172 = vmatpush.bf16.msra.mxu1 %v2543_v19  ;;  %v2752_v7 = vld [vmem:[%s5100_s2 + $0x2f0] sm:$0xf0] }
  0x2b   : > { %1777 = vadd.xlane.f32.xlu0 %v1776_v6  ;;  %v2398_v22 = vld [vmem:[%s5100_s2 + $0x20] sm:$0xf]  ;;  %v2914_v23 = vld [vmem:[%s5100_s2 + $0x2c] sm:$0xf0]  ;;  %v2799_v24 = vor.u32 %v3014_v21, %v2798_v18  ;;  %v2755_v16 = vor.u32 %v3000_v5, %v2752_v7  ;;  %v3606_v18 = vld [vmem:[%s3435_s28 + $0x78] sm:$0xff] }
  0x2c   : > { %v2526_v25 = vld [vmem:[%s5100_s2 + $0x120] sm:$0xf]  ;;  %v2946_v26 = vld [vmem:[%s5100_s2 + $0x12c] sm:$0xf0]  ;;  %v2399_v29 = vor.u32 %v2914_v23, %v2398_v22  ;;  %1211 = vmatpush.bf16.msra.mxu2 %v2671_v20  ;;  %v3610_v20 = vpack.c.bf16 %v285_v4, %v281_v3  ;;  %v2936_v21 = vld [vmem:[%s5100_s2 + $0xe4] sm:$0xf] }
  0x2d   : > { %v2654_v27 = vld [vmem:[%s5100_s2 + $0x220] sm:$0xf]  ;;  %v2978_v30 = vld [vmem:[%s5100_s2 + $0x22c] sm:$0xf0]  ;;  %v2527_v35 = vor.u32 %v2946_v26, %v2526_v25  ;;  %1250 = vmatpush.bf16.msra.mxu3 %v2799_v24  ;;  %v2496_v22 = vld [vmem:[%s5100_s2 + $0xf0] sm:$0xf0] }
  0x2e   : > { %v2782_v31 = vld [vmem:[%s5100_s2 + $0x320] sm:$0xf]  ;;  %v3010_v32 = vld [vmem:[%s5100_s2 + $0x32c] sm:$0xf0]  ;;  %v2655_v36 = vor.u32 %v2978_v30, %v2654_v27  ;;  %1134 = vmatpush.bf16.msra.mxu0 %v2399_v29  ;;  %v3623_v24 = vld [vmem:[%s3435_s28 + $0xb8] sm:$0xff]  ;;  %v2499_v26 = vor.u32 %v2936_v21, %v2496_v22 }
  0x2f   : > { %v2382_v37 = vld [vmem:[%s5100_s2] sm:$0xf]  ;;  %v2910_v38 = vld [vmem:[%s5100_s2 + $0xc] sm:$0xf0]  ;;  %v2783_v39 = vor.u32 %v3010_v32, %v2782_v31  ;;  %1173 = vmatpush.bf16.msra.mxu1 %v2527_v35  ;;  %v3032_v27 = vld [vmem:[%s5100_s2 + $0x3e4] sm:$0xf] }
  0x30   : > { %v3551_v40 = vld [vmem:[%s3435_s28 + $0x80] sm:$0xff]  ;;  %v2942_v43 = vld [vmem:[%s5100_s2 + $0x10c] sm:$0xf0]  ;;  %1792 = vadd.xlane.f32.xlu2 %v1791_v28  ;;  %v2383_v47 = vor.u32 %v2910_v38, %v2382_v37  ;;  %1212 = vmatpush.bf16.msra.mxu2 %v2655_v36  ;;  %v2880_v28 = vld [vmem:[%s5100_s2 + $0x3f0] sm:$0xf0] }
  0x31   : > { %v2510_v42 = vld [vmem:[%s5100_s2 + $0x100] sm:$0xf]  ;;  %v2974_v48 = vld [vmem:[%s5100_s2 + $0x20c] sm:$0xf0]  ;;  %1786 = vadd.xlane.f32.xlu1 %v1785_v33  ;;  %1251 = vmatpush.bf16.msra.mxu3 %v2783_v39  ;;  %v1800_v6 = vadd.f32 %v3554_v41, %v3551_v40  ;;  %v2968_v29 = vld [vmem:[%s5100_s2 + $0x1e4] sm:$0xf]  ;;  %v2883_v32 = vor.u32 %v3032_v27, %v2880_v28 }
  0x32   : > { %v2638_v44 = vld [vmem:[%s5100_s2 + $0x200] sm:$0xf]  ;;  %v3006_v50 = vld [vmem:[%s5100_s2 + $0x30c] sm:$0xf0]  ;;  %v2511_v54 = vor.u32 %v2942_v43, %v2510_v42  ;;  %1135 = vmatpush.bf16.msra.mxu0 %v2383_v47  ;;  %v3640_v31 = vld [vmem:[%s3435_s28 + $0x98] sm:$0xff] }
  0x33   : > { %v3566_v45 = vld [vmem:[%s3435_s28 + $0x60] sm:$0xff]  ;;  %1780 = vadd.xlane.f32.xlu0 %v1779_v34  ;;  %v2639_v55 = vor.u32 %v2974_v48, %v2638_v44  ;;  %v280_v57 = vld [vmem:[%s3542_s9 + $0x10] sm:$0xff]  ;;  %v287_v22 = vld [vmem:[%s3542_s9 + $0x48] sm:$0xff] }
  0x34   : > { %v2766_v49 = vld [vmem:[%s5100_s2 + $0x300] sm:$0xf]  ;;  %v284_v58 = vld [vmem:[%s3542_s9 + $0x30] sm:$0xff]  ;;  %v1794_v10 = vadd.f32 %v3569_v46, %v3566_v45  ;;  %1174 = vmatpush.bf16.msra.mxu1 %v2511_v54  ;;  %v2996_v35 = vld [vmem:[%s5100_s2 + $0x2c4] sm:$0xf] }
  0x35   : > { %v278_v51 = vld [vmem:[%s3542_s9] sm:$0xff]  ;;  %v2767_v62 = vor.u32 %v3006_v50, %v2766_v49  ;;  %v3603_v17 = vld [vmem:[%s3435_s28 + $0x70] sm:$0xff]  ;;  %1213 = vmatpush.bf16.msra.mxu2 %v2639_v55  ;;  %v3608_v19 = vpack.c.bf16 %v284_v58, %v280_v57  ;;  %v3672_v49 = vld [vmem:[%s3435_s28 + $0xa8] sm:$0xff] }
  0x36   : > { %v282_v52 = vld [vmem:[%s3542_s9 + $0x20] sm:$0xff]  ;;  %v3620_v23 = vld [vmem:[%s3435_s28 + $0xb0] sm:$0xff]  ;;  %v1797_v25 = vadd.f32 %v3606_v18, %v3603_v17  ;;  %1284 = vmatpush.bf16.msrb.mxu0 %v2499_v26  ;;  %v291_v27 = vld [vmem:[%s3542_s9 + $0x68] sm:$0xff] }
  0x37   : > { %v3586_v63 = vpack.c.bf16 %v282_v52, %v278_v51  ;;  %1252 = vmatpush.bf16.msra.mxu3 %v2767_v62  ;;  %v3637_v30 = vld [vmem:[%s3435_s28 + $0x90] sm:$0xff]  ;;  %1175 = vmatmul.bf16.vlgmr.msra.gmra.mxu1 %v3600_v15  ;;  %v2932_v37 = vld [vmem:[%s5100_s2 + $0xc4] sm:$0xf]  ;;  %v1809_v47 = vadd.f32 %v3623_v24, %v3620_v23 }
  0x38   : > { %1801 = vadd.xlane.f32.xlu2 %v1800_v6  ;;  %v2624_v33 = vld [vmem:[%s5100_s2 + $0x1f0] sm:$0xf0]  ;;  %1214 = vmatmul.bf16.vlgmr.msra.gmra.mxu2 %v3608_v19  ;;  %v3028_v42 = vld [vmem:[%s5100_s2 + $0x3c4] sm:$0xf]  ;;  %v1803_v51 = vadd.f32 %v3640_v31, %v3637_v30 }
  0x39   : > { %1136 = vmatmul.bf16.vlgmr.msra.gmra.mxu0 %v3586_v63  ;;  %1362 = vmatpush.bf16.msrb.mxu2 %v2755_v16  ;;  %v2627_v34 = vor.u32 %v2968_v29, %v2624_v33  ;;  %v2736_v36 = vld [vmem:[%s5100_s2 + $0x2d0] sm:$0xf0]  ;;  %v3669_v48 = vld [vmem:[%s3435_s28 + $0xa0] sm:$0xff]  ;;  %v289_v33 = vld [vmem:[%s3542_s9 + $0x58] sm:$0xff]  ;;  %s3040_s28 = smul.u32 192, %s235_s7 }
  0x3a   : > { %1253 = vmatmul.bf16.vlgmr.msra.gmra.mxu3 %v3610_v20  ;;  %v2739_v38 = vor.u32 %v2996_v35, %v2736_v36  ;;  %v2480_v39 = vld [vmem:[%s5100_s2 + $0xd0] sm:$0xf0]  ;;  %1798 = vadd.xlane.f32.xlu1 %v1797_v25  ;;  %v2964_v52 = vld [vmem:[%s5100_s2 + $0x1c4] sm:$0xf]  ;;  %v1806_v58 = vadd.f32 %v3672_v49, %v3669_v48 }
  0x3b   : > { %1795 = vadd.xlane.f32.xlu0 %v1794_v10  ;;  %v2864_v43 = vld [vmem:[%s5100_s2 + $0x3d0] sm:$0xf0]  ;;  %v2483_v44 = vor.u32 %v2932_v37, %v2480_v39  ;;  %1401 = vmatpush.bf16.msrb.mxu3 %v2883_v32  ;;  %v286_v53 = vld [vmem:[%s3542_s9 + $0x40] sm:$0xff]  ;;  %v3730_v39 = vpack.c.bf16 %v291_v27, %v287_v22  ;;  %s4861_s15 = scalar_lea.vmem [#allocation2], %s3040_s28  }
  0x3c   : > { %1323 = vmatpush.bf16.msrb.mxu1 %v2627_v34  ;;  %v2867_v50 = vor.u32 %v3028_v42, %v2864_v43  ;;  %v290_v54 = vld [vmem:[%s3542_s9 + $0x60] sm:$0xff]  ;;  %v2608_v55 = vld [vmem:[%s5100_s2 + $0x1d0] sm:$0xf0]  ;;  %v293_v34 = vld [vmem:[%s3542_s9 + $0x78] sm:$0xff] }
  0x3d   : > { %1363 = vmatpush.bf16.msrb.mxu2 %v2739_v38  ;;  %v2720_v57 = vld [vmem:[%s5100_s2 + $0x2b0] sm:$0xf0]  ;;  %1285 = vmatpush.bf16.msrb.mxu0 %v2483_v44  ;;  %v2611_v62 = vor.u32 %v2964_v52, %v2608_v55  ;;  %v2928_v4 = vld [vmem:[%s5100_s2 + $0xa4] sm:$0xf]  ;;  %v3714_v32 = vpack.c.bf16 %v290_v54, %v286_v53  ;;  %v3743_v52 = vpack.c.bf16 %v293_v34, %v289_v33 }
  0x3e   : > { %v2723_v3 = vor.u32 %v2992_v56, %v2720_v57  ;;  %v2464_v5 = vld [vmem:[%s5100_s2 + $0xb0] sm:$0xf0]  ;;  %v3024_v6 = vld [vmem:[%s5100_s2 + $0x3a4] sm:$0xf] }
  0x3f   : > { %1402 = vmatpush.bf16.msrb.mxu3 %v2867_v50  ;;  %v2467_v7 = vor.u32 %v2928_v4, %v2464_v5  ;;  %v2848_v10 = vld [vmem:[%s5100_s2 + $0x3b0] sm:$0xf0]  ;;  %v2960_v16 = vld [vmem:[%s5100_s2 + $0x1a4] sm:$0xf] }
  0x40   : > { %1810 = vadd.xlane.f32.xlu2 %v1809_v47  ;;  %v2592_v21 = vld [vmem:[%s5100_s2 + $0x1b0] sm:$0xf0]  ;;  %1324 = vmatpush.bf16.msrb.mxu1 %v2611_v62  ;;  %v2851_v25 = vor.u32 %v3024_v6, %v2848_v10  ;;  %v2988_v35 = vld [vmem:[%s5100_s2 + $0x284] sm:$0xf] }
  0x41   : > { %v2595_v26 = vor.u32 %v2960_v16, %v2592_v21  ;;  %v288_v28 = vld [vmem:[%s3542_s9 + $0x50] sm:$0xff]  ;;  %1364 = vmatpush.bf16.msrb.mxu2 %v2723_v3  ;;  %1286 = vmatpush.bf16.msrb.mxu0 %v2467_v7  ;;  %v2924_v37 = vld [vmem:[%s5100_s2 + $0x84] sm:$0xf] }
  0x42   : > { %v292_v29 = vld [vmem:[%s3542_s9 + $0x70] sm:$0xff]  ;;  %1807 = vadd.xlane.f32.xlu1 %v1806_v58  ;;  %v3020_v44 = vld [vmem:[%s5100_s2 + $0x384] sm:$0xf] }
  0x43   : > { %1804 = vadd.xlane.f32.xlu0 %v1803_v51  ;;  %1403 = vmatpush.bf16.msrb.mxu3 %v2851_v25  ;;  %v2704_v36 = vld [vmem:[%s5100_s2 + $0x290] sm:$0xf0]  ;;  %v2956_v50 = vld [vmem:[%s5100_s2 + $0x184] sm:$0xf]  ;;  %v3741_v51 = vpack.c.bf16 %v292_v29, %v288_v28 }
  0x44   : > { %v2448_v38 = vld [vmem:[%s5100_s2 + $0x90] sm:$0xf0]  ;;  %1325 = vmatpush.bf16.msrb.mxu1 %v2595_v26  ;;  %v2707_v42 = vor.u32 %v2988_v35, %v2704_v36  ;;  %v2984_v56 = vld [vmem:[%s5100_s2 + $0x264] sm:$0xf] }
  0x45   : > { %v2451_v43 = vor.u32 %v2924_v37, %v2448_v38  ;;  %v2832_v47 = vld [vmem:[%s5100_s2 + $0x390] sm:$0xf0]  ;;  %v2920_v58 = vld [vmem:[%s5100_s2 + $0x64] sm:$0xf]  ;;  %v295_v38 = vld [vmem:[%s3542_s9 + $0x88] sm:$0xff] }
  0x46   : > { %v2835_v53 = vor.u32 %v3020_v44, %v2832_v47  ;;  %v2576_v54 = vld [vmem:[%s5100_s2 + $0x190] sm:$0xf0]  ;;  %1365 = vmatpush.bf16.msrb.mxu2 %v2707_v42  ;;  %v3016_v5 = vld [vmem:[%s5100_s2 + $0x364] sm:$0xf]  ;;  %v299_v42 = vld [vmem:[%s3542_s9 + $0xa8] sm:$0xff] }
  0x47   : > { %v2579_v55 = vor.u32 %v2956_v50, %v2576_v54  ;;  %1287 = vmatpush.bf16.msrb.mxu0 %v2451_v43  ;;  %1180 = vmatmul.bf16.gmra.mxu1 %v3730_v39  ;;  %v2688_v57 = vld [vmem:[%s5100_s2 + $0x270] sm:$0xf0]  ;;  %v2952_v7 = vld [vmem:[%s5100_s2 + $0x164] sm:$0xf]  ;;  %v297_v50 = vld [vmem:[%s3542_s9 + $0x98] sm:$0xff]  ;;  %v3804_v54 = vpack.c.bf16 %v299_v42, %v295_v38 }
  0x48   : > { %1404 = vmatpush.bf16.msrb.mxu3 %v2835_v53  ;;  %1219 = vmatmul.bf16.gmra.mxu2 %v3741_v51  ;;  %v2432_v62 = vld [vmem:[%s5100_s2 + $0x70] sm:$0xf0]  ;;  %v2691_v3 = vor.u32 %v2984_v56, %v2688_v57  ;;  %v2980_v21 = vld [vmem:[%s5100_s2 + $0x244] sm:$0xf]  ;;  %v301_v53 = vld [vmem:[%s3542_s9 + $0xb8] sm:$0xff] }
  0x49   : > { %1141 = vmatmul.bf16.gmra.mxu0 %v3714_v32  ;;  %1326 = vmatpush.bf16.msrb.mxu1 %v2579_v55  ;;  %v2435_v4 = vor.u32 %v2920_v58, %v2432_v62  ;;  %v2816_v6 = vld [vmem:[%s5100_s2 + $0x370] sm:$0xf0]  ;;  %v2916_v27 = vld [vmem:[%s5100_s2 + $0x44] sm:$0xf]  ;;  %v3808_v56 = vpack.c.bf16 %v301_v53, %v297_v50  ;;  %v305_v38 = vld [vmem:[%s3542_s9 + $0xd8] sm:$0xff] }
  0x4a   : > { %1258 = vmatmul.bf16.gmra.mxu3 %v3743_v52  ;;  %v2819_v10 = vor.u32 %v3016_v5, %v2816_v6  ;;  %v2560_v16 = vld [vmem:[%s5100_s2 + $0x170] sm:$0xf0]  ;;  %1366 = vmatpush.bf16.msrb.mxu2 %v2691_v3  ;;  %v3012_v29 = vld [vmem:[%s5100_s2 + $0x344] sm:$0xf]  ;;  %v309_v42 = vld [vmem:[%s3542_s9 + $0xf8] sm:$0xff] }
  0x4b   : > { %v2672_v22 = vld [vmem:[%s5100_s2 + $0x250] sm:$0xf0]  ;;  %1288 = vmatpush.bf16.msrb.mxu0 %v2435_v4  ;;  %v2563_v25 = vor.u32 %v2952_v7, %v2560_v16  ;;  %v294_v35 = vld [vmem:[%s3542_s9 + $0x80] sm:$0xff]  ;;  %5129 = vst [vmem:[#allocation3_spill] sm:$0xff] %v3808_v56  ;;  %v3858_v50 = vpack.c.bf16 %v309_v42, %v305_v38 }
  0x4c   : > { %v2675_v26 = vor.u32 %v2980_v21, %v2672_v22  ;;  %v2416_v28 = vld [vmem:[%s5100_s2 + $0x50] sm:$0xf0]  ;;  %1405 = vmatpush.bf16.msrb.mxu3 %v2819_v10  ;;  %v298_v36 = vld [vmem:[%s3542_s9 + $0xa0] sm:$0xff] }
  0x4d   : > { %v2419_v33 = vor.u32 %v2916_v27, %v2416_v28  ;;  %v2800_v34 = vld [vmem:[%s5100_s2 + $0x350] sm:$0xf0]  ;;  %1327 = vmatpush.bf16.msrb.mxu1 %v2563_v25  ;;  %v3799_v44 = vpack.c.bf16 %v298_v36, %v294_v35  ;;  %v2948_v57 = vld [vmem:[%s5100_s2 + $0x144] sm:$0xf]  ;;  %5133 = vst [vmem:[#allocation7_spill] sm:$0xff] %v3858_v50 }
  0x4e   : > { %v2803_v37 = vor.u32 %v3012_v29, %v2800_v34  ;;  %v296_v43 = vld [vmem:[%s3542_s9 + $0x90] sm:$0xff]  ;;  %1367 = vmatpush.bf16.msrb.mxu2 %v2675_v26  ;;  %v2976_v62 = vld [vmem:[%s5100_s2 + $0x224] sm:$0xf]  ;;  %v307_v34 = vld [vmem:[%s3542_s9 + $0xe8] sm:$0xff] }
  0x4f   : > { %1289 = vmatpush.bf16.msrb.mxu0 %v2419_v33  ;;  %v300_v47 = vld [vmem:[%s3542_s9 + $0xb0] sm:$0xff]  ;;  %v2912_v6 = vld [vmem:[%s5100_s2 + $0x24] sm:$0xf]  ;;  %v303_v33 = vld [vmem:[%s3542_s9 + $0xc8] sm:$0xff] }
  0x50   : > { %1406 = vmatpush.bf16.msrb.mxu3 %v2803_v37  ;;  %v3806_v55 = vpack.c.bf16 %v300_v47, %v296_v43  ;;  %v2544_v58 = vld [vmem:[%s5100_s2 + $0x150] sm:$0xf0]  ;;  %v3008_v10 = vld [vmem:[%s5100_s2 + $0x324] sm:$0xf]  ;;  %v3854_v43 = vpack.c.bf16 %v307_v34, %v303_v33  ;;  %v313_v34 = vld [vmem:[%s3542_s9 + $0x118] sm:$0xff] }
  0x51   : > { %v2656_v3 = vld [vmem:[%s5100_s2 + $0x230] sm:$0xf0]  ;;  %v2547_v4 = vor.u32 %v2948_v57, %v2544_v58  ;;  %v2944_v22 = vld [vmem:[%s5100_s2 + $0x124] sm:$0xf] }
  0x52   : > { %v2659_v5 = vor.u32 %v2976_v62, %v2656_v3  ;;  %v2400_v7 = vld [vmem:[%s5100_s2 + $0x30] sm:$0xf0]  ;;  %v302_v28 = vld [vmem:[%s3542_s9 + $0xc0] sm:$0xff]  ;;  %5131 = vst [vmem:[#allocation5_spill] sm:$0xff] %v3854_v43 }
  0x53   : > { %v2403_v16 = vor.u32 %v2912_v6, %v2400_v7  ;;  %v2784_v21 = vld [vmem:[%s5100_s2 + $0x330] sm:$0xf0]  ;;  %1328 = vmatpush.bf16.msrb.mxu1 %v2547_v4  ;;  %v306_v29 = vld [vmem:[%s3542_s9 + $0xe0] sm:$0xff] }
  0x54   : > { %v2528_v25 = vld [vmem:[%s5100_s2 + $0x130] sm:$0xf0]  ;;  %1368 = vmatpush.bf16.msrb.mxu2 %v2659_v5  ;;  %v2787_v26 = vor.u32 %v3008_v10, %v2784_v21  ;;  %v3849_v36 = vpack.c.bf16 %v306_v29, %v302_v28  ;;  %v2972_v53 = vld [vmem:[%s5100_s2 + $0x204] sm:$0xf] }
  0x55   : > { %v2531_v27 = vor.u32 %v2944_v22, %v2528_v25  ;;  %1290 = vmatpush.bf16.msrb.mxu0 %v2403_v16  ;;  %v304_v35 = vld [vmem:[%s3542_s9 + $0xd0] sm:$0xff]  ;;  %v2908_v58 = vld [vmem:[%s5100_s2 + $0x4] sm:$0xf] }
  0x56   : > { %1407 = vmatpush.bf16.msrb.mxu3 %v2787_v26  ;;  %5130 = vst [vmem:[#allocation4_spill] sm:$0xff] %v3849_v36  ;;  %v308_v37 = vld [vmem:[%s3542_s9 + $0xf0] sm:$0xff]  ;;  %v3004_v5 = vld [vmem:[%s5100_s2 + $0x304] sm:$0xf]  ;;  %v311_v26 = vld [vmem:[%s3542_s9 + $0x108] sm:$0xff] }
  0x57   : > { %1185 = vmatmul.bf16.gmra.mxu1 %v3804_v54  ;;  %v3856_v47 = vpack.c.bf16 %v308_v37, %v304_v35  ;;  %v2640_v57 = vld [vmem:[%s5100_s2 + $0x210] sm:$0xf0]  ;;  %v2940_v7 = vld [vmem:[%s5100_s2 + $0x104] sm:$0xf]  ;;  %v317_v35 = vld [vmem:[%s3542_s9 + $0x138] sm:$0xff] }
  0x58   : > { %1224 = vmatmul.bf16.gmra.mxu2 %v3806_v55  ;;  %1329 = vmatpush.bf16.msrb.mxu1 %v2531_v27  ;;  %v2384_v62 = vld [vmem:[%s5100_s2 + $0x10] sm:$0xf0]  ;;  %v2643_v3 = vor.u32 %v2972_v53, %v2640_v57  ;;  %v310_v22 = vld [vmem:[%s3542_s9 + $0x100] sm:$0xff]  ;;  %v315_v27 = vld [vmem:[%s3542_s9 + $0x128] sm:$0xff]  ;;  %v3902_v42 = vpack.c.bf16 %v317_v35, %v313_v34 }
  0x59   : > { %1146 = vmatmul.bf16.gmra.mxu0 %v3799_v44  ;;  %5132 = vst [vmem:[#allocation6_spill] sm:$0xff] %v3856_v47  ;;  %v2387_v4 = vor.u32 %v2908_v58, %v2384_v62  ;;  %v2768_v6 = vld [vmem:[%s5100_s2 + $0x310] sm:$0xf0]  ;;  %v314_v25 = vld [vmem:[%s3542_s9 + $0x120] sm:$0xff]  ;;  %v3898_v37 = vpack.c.bf16 %v315_v27, %v311_v26  ;;  %v2758_v58 = vld [vmem:[%s5100_s2 + $0x2e8] sm:$0xf] }
  0x5a   : > { %1263 = vmatmul.bf16.gmra.mxu3 %v3808_v56  ;;  %v2771_v10 = vor.u32 %v3004_v5, %v2768_v6  ;;  %v2512_v16 = vld [vmem:[%s5100_s2 + $0x110] sm:$0xf0]  ;;  %1369 = vmatpush.bf16.msrb.mxu2 %v2643_v3  ;;  %v3893_v29 = vpack.c.bf16 %v314_v25, %v310_v22  ;;  %5137 = vst [vmem:[#allocation11_spill] sm:$0xff] %v3902_v42  ;;  %v318_v53 = vld [vmem:[%s3542_s9 + $0x140] sm:$0xff]  ;;  %v3003_v62 = vld [vmem:[%s5100_s2 + $0x2f4] sm:$0xf0] }
  0x5b   : > { %1291 = vmatpush.bf16.msrb.mxu0 %v2387_v4  ;;  %v2515_v21 = vor.u32 %v2940_v7, %v2512_v16  ;;  %v312_v28 = vld [vmem:[%s3542_s9 + $0x110] sm:$0xff]  ;;  %5135 = vst [vmem:[#allocation9_spill] sm:$0xff] %v3898_v37  ;;  %v322_v57 = vld [vmem:[%s3542_s9 + $0x160] sm:$0xff]  ;;  %v2502_v3 = vld [vmem:[%s5100_s2 + $0xe8] sm:$0xf]  ;;  %v2759_v4 = vor.u32 %v3003_v62, %v2758_v58 }
  0x5c   : > { %1408 = vmatpush.bf16.msrb.mxu3 %v2771_v10  ;;  %5134 = vst [vmem:[#allocation8_spill] sm:$0xff] %v3893_v29  ;;  %v316_v33 = vld [vmem:[%s3542_s9 + $0x130] sm:$0xff]  ;;  %v2939_v5 = vld [vmem:[%s5100_s2 + $0xf4] sm:$0xf0]  ;;  %v2886_v6 = vld [vmem:[%s5100_s2 + $0x3e8] sm:$0xf]  ;;  %v3937_v34 = vpack.c.bf16 %v322_v57, %v318_v53 }
  0x5d   : > { %1330 = vmatpush.bf16.msrb.mxu1 %v2515_v21  ;;  %v3900_v38 = vpack.c.bf16 %v316_v33, %v312_v28  ;;  %v3035_v7 = vld [vmem:[%s5100_s2 + $0x3f4] sm:$0xf0]  ;;  %v3252_v10 = vmov 256.0   ;;  %v2503_v16 = vor.u32 %v2939_v5, %v2502_v3  ;;  %v2630_v22 = vld [vmem:[%s5100_s2 + $0x1e8] sm:$0xf]  ;;  %v320_v28 = vld [vmem:[%s3542_s9 + $0x150] sm:$0xff] }
  0x5e   : > { %3131 = vrcp.f32 %v3252_v10  ;;  %v2887_v21 = vor.u32 %v3035_v7, %v2886_v6  ;;  %v2971_v25 = vld [vmem:[%s5100_s2 + $0x1f4] sm:$0xf0]  ;;  %v319_v26 = vld [vmem:[%s3542_s9 + $0x148] sm:$0xff]  ;;  %1518 = vmatpush.bf16.msra.mxu2 %v2759_v4  ;;  %v324_v35 = vld [vmem:[%s3542_s9 + $0x170] sm:$0xff] }
  0x5f   : > { %5136 = vst [vmem:[#allocation10_spill] sm:$0xff] %v3900_v38  ;;  %v323_v27 = vld [vmem:[%s3542_s9 + $0x168] sm:$0xff]  ;;  %v2631_v33 = vor.u32 %v2971_v25, %v2630_v22  ;;  %v321_v58 = vld [vmem:[%s3542_s9 + $0x158] sm:$0xff]  ;;  %1440 = vmatpush.bf16.msra.mxu0 %v2503_v16  ;;  %v3944_v5 = vpack.c.bf16 %v324_v35, %v320_v28 }
  0x60   : > { %v325_v62 = vld [vmem:[%s3542_s9 + $0x178] sm:$0xff]  ;;  %1557 = vmatpush.bf16.msra.mxu3 %v2887_v21  ;;  %v3942_v3 = vpack.c.bf16 %v323_v27, %v319_v26  ;;  %v2742_v53 = vld [vmem:[%s5100_s2 + $0x2c8] sm:$0xf] }
  0x61   : > { %1479 = vmatpush.bf16.msra.mxu1 %v2631_v33  ;;  %v3946_v6 = vpack.c.bf16 %v325_v62, %v321_v58  ;;  %v2999_v57 = vld [vmem:[%s5100_s2 + $0x2d4] sm:$0xf0]  ;;  %v2486_v21 = vld [vmem:[%s5100_s2 + $0xc8] sm:$0xf] }
  0x62   : > { %v2743_v4 = vor.u32 %v2999_v57, %v2742_v53  ;;  %v2935_v22 = vld [vmem:[%s5100_s2 + $0xd4] sm:$0xf0]  ;;  %v2870_v25 = vld [vmem:[%s5100_s2 + $0x3c8] sm:$0xf] }
  0x63   : > { %v2487_v26 = vor.u32 %v2935_v22, %v2486_v21  ;;  %v3031_v27 = vld [vmem:[%s5100_s2 + $0x3d4] sm:$0xf0]  ;;  %v2614_v28 = vld [vmem:[%s5100_s2 + $0x1c8] sm:$0xf] }
  0x64   : > { %v3132_v7 = vpop.eup %3131  ;;  %1519 = vmatpush.bf16.msra.mxu2 %v2743_v4  ;;  %v2967_v33 = vld [vmem:[%s5100_s2 + $0x1d4] sm:$0xf0]  ;;  %v2871_v35 = vor.u32 %v3031_v27, %v2870_v25  ;;  %v2726_v57 = vld [vmem:[%s5100_s2 + $0x2a8] sm:$0xf] }
  0x65   : > { %v1813_v10 = vmul.f32 256.0, %v3132_v7  ;;  %v2615_v58 = vor.u32 %v2967_v33, %v2614_v28  ;;  %1441 = vmatpush.bf16.msra.mxu0 %v2487_v26  ;;  %vm1817_vm0 = vweird.f32 %v3132_v7  ;;  %v2995_v4 = vld [vmem:[%s5100_s2 + $0x2b4] sm:$0xf0]  ;;  %v2854_v22 = vld [vmem:[%s5100_s2 + $0x3a8] sm:$0xf] }
  0x66   : > { %1558 = vmatpush.bf16.msra.mxu3 %v2871_v35  ;;  %v2931_v21 = vld [vmem:[%s5100_s2 + $0xb4] sm:$0xf0]  ;;  %v2598_v28 = vld [vmem:[%s5100_s2 + $0x1a8] sm:$0xf] }
  0x67   : > { %1190 = vmatmul.bf16.gmra.mxu1 %v3854_v43  ;;  %v1814_v16 = vsub.f32 1.0, %v1813_v10  ;;  %v2470_v10 = vld [vmem:[%s5100_s2 + $0xa8] sm:$0xf]  ;;  %v3027_v25 = vld [vmem:[%s5100_s2 + $0x3b4] sm:$0xf0] }
  0x68   : > { %1229 = vmatmul.bf16.gmra.mxu2 %v3856_v47  ;;  %1480 = vmatpush.bf16.msra.mxu1 %v2615_v58  ;;  %v2471_v26 = vor.u32 %v2931_v21, %v2470_v10  ;;  %v2855_v27 = vor.u32 %v3027_v25, %v2854_v22  ;;  %v2963_v33 = vld [vmem:[%s5100_s2 + $0x1b4] sm:$0xf0]  ;;  %v2710_v25 = vld [vmem:[%s5100_s2 + $0x288] sm:$0xf] }
  0x69   : > { %1151 = vmatmul.bf16.gmra.mxu0 %v3849_v36  ;;  %v1815_v62 = vmul.f32 %v3132_v7, %v1814_v16  ;;  %v2727_v16 = vor.u32 %v2995_v4, %v2726_v57  ;;  %v2599_v58 = vor.u32 %v2963_v33, %v2598_v28 }
  0x6a   : > { %1268 = vmatmul.bf16.gmra.mxu3 %v3858_v50  ;;  %1442 = vmatpush.bf16.msra.mxu0 %v2471_v26  ;;  %v2991_v26 = vld [vmem:[%s5100_s2 + $0x294] sm:$0xf0] }
  0x6b   : > { %v1816_v53 = vadd.f32 %v3132_v7, %v1815_v62  ;;  %1520 = vmatpush.bf16.msra.mxu2 %v2727_v16  ;;  %1559 = vmatpush.bf16.msra.mxu3 %v2855_v27  ;;  %v2711_v28 = vor.u32 %v2991_v26, %v2710_v25  ;;  %v2454_v26 = vld [vmem:[%s5100_s2 + $0x88] sm:$0xf] }
  0x6c   : > { %1481 = vmatpush.bf16.msra.mxu1 %v2599_v58 }
  0x6d   : > { %v4002_v35 = vsel %vm1817_vm0, %v3132_v7, %v1816_v53 }
  0x6f   : > { %1521 = vmatpush.bf16.msra.mxu2 %v2711_v28 }
  0x77   : > { %1195 = vmatmul.bf16.gmra.mxu1 %v3898_v37 }
  0x78   : > { %1234 = vmatmul.bf16.gmra.mxu2 %v3900_v38 }
  0x79   : > { %1156 = vmatmul.bf16.gmra.mxu0 %v3893_v29 }
  0x7a   : > { %1273 = vmatmul.bf16.gmra.mxu3 %v3902_v42 }
  0x87   : > { %1200 = vmatmul.bf16.gmra.mxu1 %v3942_v3 }
  0x88   : > { %1239 = vmatmul.bf16.gmra.mxu2 %v3944_v5 }
  0x89   : > { %1161 = vmatmul.bf16.gmra.mxu0 %v3937_v34 }
  0x8a   : > { %1278 = vmatmul.bf16.gmra.mxu3 %v3946_v6 }
  0x97   : > { %1331 = vmatmul.bf16.vlgmr.msrb.gmra.mxu1 %v3600_v15 }
  0x98   : > { %1370 = vmatmul.bf16.vlgmr.msrb.gmra.mxu2 %v3608_v19 }
  0x99   : > { %1292 = vmatmul.bf16.vlgmr.msrb.gmra.mxu0 %v3586_v63 }
  0x9a   : > { %1409 = vmatmul.bf16.vlgmr.msrb.gmra.mxu3 %v3610_v20 }
  0x9b   : > { %v1790_v62 = vpop.xlane.xlu2 %1789 }
  0x9c   : > { %v1784_v57 = vpop.xlane.xlu1 %1783  ;;  %v1823_v27 = vmul.f32 %v4002_v35, %v1790_v62 }
  0x9d   : > { %v1821_v10 = vmul.f32 %v4002_v35, %v1784_v57 }
  0x9e   : > { %v1778_v4 = vpop.xlane.xlu0 %1777 }
  0x9f   : > { %v1819_v21 = vmul.f32 %v4002_v35, %v1778_v4  ;;  %v4009_v22 = vsub.f32 %v3453_v61, %v1821_v10  ;;  %v4012_v7 = vsub.f32 %v3461_v0, %v1821_v10 }
  0xa1   : > { %5138 = vst [vmem:[#allocation12_spill] sm:$0xff] %v4009_v22  ;;  %v4015_v53 = vsub.f32 %v3464_v1, %v1819_v21  ;;  %v4018_v16 = vsub.f32 %v3467_v2, %v1819_v21  ;;  %v1859_v61 = vmul.f32 %v4009_v22, %v4009_v22  ;;  %v1860_v0 = vmul.f32 %v4012_v7, %v4012_v7 }
  0xa2   : > { %5139 = vst [vmem:[#allocation13_spill] sm:$0xff] %v4012_v7 }
  0xa3   : > { %5140 = vst [vmem:[#allocation14_spill] sm:$0xff] %v4015_v53  ;;  %v1855_v1 = vmul.f32 %v4015_v53, %v4015_v53  ;;  %v1856_v2 = vmul.f32 %v4018_v16, %v4018_v16  ;;  %v1793_v33 = vpop.xlane.xlu2 %1792  ;;  %v1885_v58 = vadd.f32 %v1860_v0, %v1859_v61  ;;  %v4039_v53 = vsub.f32 %v3447_v59, %v1823_v27  ;;  %v2927_v61 = vld [vmem:[%s5100_s2 + $0x94] sm:$0xf0]  ;;  %v2838_v0 = vld [vmem:[%s5100_s2 + $0x388] sm:$0xf] }
  0xa4   : > { %v1824_v4 = vmul.f32 %v4002_v35, %v1793_v33  ;;  %v1787_v10 = vpop.xlane.xlu1 %1786 }
  0xa5   : > { %v1879_v57 = vadd.f32 %v1856_v2, %v1855_v1  ;;  %v1822_v22 = vmul.f32 %v4002_v35, %v1787_v10  ;;  %1886 = vadd.xlane.f32.xlu2 %v1885_v58  ;;  %5141 = vst [vmem:[#allocation15_spill] sm:$0xff] %v4039_v53  ;;  %v3023_v2 = vld [vmem:[%s5100_s2 + $0x394] sm:$0xf0] }
  0xa6   : > { %v1781_v21 = vpop.xlane.xlu0 %1780  ;;  %v4042_v62 = vsub.f32 %v3474_v8, %v1824_v4  ;;  %v4045_v25 = vsub.f32 %v3477_v9, %v1824_v4  ;;  %v4092_v4 = vsub.f32 %v3450_v60, %v1823_v27 }
  0xa7   : > { %v1820_v7 = vmul.f32 %v4002_v35, %v1781_v21  ;;  %1880 = vadd.xlane.f32.xlu0 %v1879_v57  ;;  %v4057_v59 = vsub.f32 %v3484_v11, %v1822_v22  ;;  %v4060_v8 = vsub.f32 %v3487_v12, %v1822_v22  ;;  %v2582_v11 = vld [vmem:[%s5100_s2 + $0x188] sm:$0xf]  ;;  %v2959_v12 = vld [vmem:[%s5100_s2 + $0x194] sm:$0xf0]  ;;  %v2455_v22 = vor.u32 %v2927_v61, %v2454_v26 }
  0xa8   : > { %5142 = vst [vmem:[#allocation16_spill] sm:$0xff] %v4042_v62  ;;  %1336 = vmatmul.bf16.gmra.mxu1 %v3730_v39  ;;  %1375 = vmatmul.bf16.gmra.mxu2 %v3741_v51  ;;  %v2583_v21 = vor.u32 %v2959_v12, %v2582_v11  ;;  %v2694_v26 = vld [vmem:[%s5100_s2 + $0x268] sm:$0xf]  ;;  %v2987_v61 = vld [vmem:[%s5100_s2 + $0x274] sm:$0xf0] }
  0xa9   : > { %5143 = vst [vmem:[#allocation17_spill] sm:$0xff] %v4057_v59  ;;  %v4063_v9 = vsub.f32 %v3490_v13, %v1820_v7  ;;  %v4066_v1 = vsub.f32 %v3493_v14, %v1820_v7  ;;  %1297 = vmatmul.bf16.gmra.mxu0 %v3714_v32  ;;  %v1865_v13 = vmul.f32 %v4042_v62, %v4042_v62  ;;  %v2923_v11 = vld [vmem:[%s5100_s2 + $0x74] sm:$0xf0]  ;;  %v2822_v12 = vld [vmem:[%s5100_s2 + $0x368] sm:$0xf] }
  0xaa   : > { %v1866_v14 = vmul.f32 %v4045_v25, %v4045_v25  ;;  %v2839_v7 = vor.u32 %v3023_v2, %v2838_v0  ;;  %v1861_v28 = vmul.f32 %v4057_v59, %v4057_v59  ;;  %v1862_v33 = vmul.f32 %v4060_v8, %v4060_v8  ;;  %1414 = vmatmul.bf16.gmra.mxu3 %v3743_v52  ;;  %v2438_v0 = vld [vmem:[%s5100_s2 + $0x68] sm:$0xf] }
  0xab   : > { %5144 = vst [vmem:[#allocation18_spill] sm:$0xff] %v4063_v9  ;;  %v1857_v58 = vmul.f32 %v4063_v9, %v4063_v9  ;;  %v1858_v57 = vmul.f32 %v4066_v1, %v4066_v1  ;;  %v1802_v60 = vpop.xlane.xlu2 %1801  ;;  %1443 = vmatpush.bf16.msra.mxu0 %v2455_v22  ;;  %1482 = vmatpush.bf16.msra.mxu1 %v2583_v21 }
  0xac   : > { %v1894_v10 = vadd.f32 %v1866_v14, %v1865_v13  ;;  %v1888_v27 = vadd.f32 %v1862_v33, %v1861_v28  ;;  %1560 = vmatpush.bf16.msra.mxu3 %v2839_v7  ;;  %v2695_v13 = vor.u32 %v2987_v61, %v2694_v26  ;;  %v3019_v14 = vld [vmem:[%s5100_s2 + $0x374] sm:$0xf0]  ;;  %v1827_v62 = vmul.f32 %v4002_v35, %v1802_v60 }
  0xad   : > { %v1882_v2 = vadd.f32 %v1858_v57, %v1857_v58  ;;  %v2439_v28 = vor.u32 %v2923_v11, %v2438_v0  ;;  %v2823_v22 = vor.u32 %v3019_v14, %v2822_v12  ;;  %v1863_v33 = vmul.f32 %v4039_v53, %v4039_v53  ;;  %v4121_v58 = vld [vmem:[%s5101_s3] sm:$0xf]  ;;  %v1799_v21 = vpop.xlane.xlu1 %1798 }
  0xae   : > { %v1796_v59 = vpop.xlane.xlu0 %1795  ;;  %1895 = vadd.xlane.f32.xlu2 %v1894_v10  ;;  %v4124_v57 = vsub.f32 %v3551_v40, %v1827_v62  ;;  %v4127_v26 = vsub.f32 %v3554_v41, %v1827_v62  ;;  %1522 = vmatpush.bf16.msra.mxu2 %v2695_v13  ;;  %v1826_v0 = vmul.f32 %v4002_v35, %v1799_v21  ;;  %v4143_v62 = vperm.slane %v4121_v58, 0 }
  0xaf   : > { %v1825_v7 = vmul.f32 %v4002_v35, %v1796_v59  ;;  %1889 = vadd.xlane.f32.xlu0 %v1888_v27  ;;  %1883 = vadd.xlane.f32.xlu1 %v1882_v2  ;;  %v1864_v59 = vmul.f32 %v4092_v4, %v4092_v4 }
  0xb0   : > { %5145 = vst [vmem:[#allocation19_spill] sm:$0xff] %v4124_v57  ;;  %1444 = vmatpush.bf16.msra.mxu0 %v2439_v28  ;;  %1561 = vmatpush.bf16.msra.mxu3 %v2823_v22  ;;  %v1871_v40 = vmul.f32 %v4124_v57, %v4124_v57  ;;  %v1872_v41 = vmul.f32 %v4127_v26, %v4127_v26 }
  0xb1   : > { %v4132_v10 = vsub.f32 %v3566_v45, %v1825_v7  ;;  %v4135_v61 = vsub.f32 %v3569_v46, %v1825_v7  ;;  %v2566_v45 = vld [vmem:[%s5100_s2 + $0x168] sm:$0xf]  ;;  %v2955_v46 = vld [vmem:[%s5100_s2 + $0x174] sm:$0xf0]  ;;  %v4152_v60 = vsub.f32 %v3603_v17, %v1826_v0  ;;  %v4155_v27 = vsub.f32 %v3606_v18, %v1826_v0 }
  0xb2   : > { %v1903_v11 = vadd.f32 %v1872_v41, %v1871_v40  ;;  %v1891_v12 = vadd.f32 %v1864_v59, %v1863_v33  ;;  %v2567_v14 = vor.u32 %v2955_v46, %v2566_v45 }
  0xb3   : > { %5146 = vst [vmem:[#allocation20_spill] sm:$0xff] %v4132_v10  ;;  %v1867_v2 = vmul.f32 %v4132_v10, %v4132_v10  ;;  %v1868_v13 = vmul.f32 %v4135_v61, %v4135_v61  ;;  %v1811_v28 = vpop.xlane.xlu2 %1810  ;;  %v1869_v17 = vmul.f32 %v4152_v60, %v4152_v60  ;;  %v1870_v18 = vmul.f32 %v4155_v27, %v4155_v27 }
  0xb4   : > { %5147 = vst [vmem:[#allocation21_spill] sm:$0xff] %v4152_v60  ;;  %v1830_v7 = vmul.f32 %v4002_v35, %v1811_v28  ;;  %1483 = vmatpush.bf16.msra.mxu1 %v2567_v14  ;;  %v1176_v45 = vpop.f32.mrf.mxu1 }
  0xb5   : > { %v1897_v22 = vadd.f32 %v1868_v13, %v1867_v2  ;;  %v1808_v41 = vpop.xlane.xlu1 %1807 }
  0xb6   : > { %v1805_v21 = vpop.xlane.xlu0 %1804  ;;  %v1137_v57 = vpop.f32.mrf.mxu0  ;;  %1904 = vadd.xlane.f32.xlu2 %v1903_v11  ;;  %v4169_v59 = vsub.f32 %v3620_v23, %v1830_v7  ;;  %v4172_v40 = vsub.f32 %v3623_v24, %v1830_v7  ;;  %v1829_v13 = vmul.f32 %v4002_v35, %v1808_v41  ;;  %v2951_v41 = vld [vmem:[%s5100_s2 + $0x154] sm:$0xf0] }
  0xb7   : > { %v1828_v0 = vmul.f32 %v4002_v35, %v1805_v21  ;;  %1898 = vadd.xlane.f32.xlu0 %v1897_v22  ;;  %v1138_v33 = vadd.f32 %v1137_v57, %v4143_v62  ;;  %1892 = vadd.xlane.f32.xlu1 %v1891_v12  ;;  %v1900_v57 = vadd.f32 %v1870_v18, %v1869_v17  ;;  %v2422_v12 = vld [vmem:[%s5100_s2 + $0x48] sm:$0xf]  ;;  %v2919_v21 = vld [vmem:[%s5100_s2 + $0x54] sm:$0xf0] }
  0xb8   : > { %5148 = vst [vmem:[#allocation22_spill] sm:$0xff] %v4169_v59  ;;  %v1877_v23 = vmul.f32 %v4169_v59, %v4169_v59  ;;  %v1878_v24 = vmul.f32 %v4172_v40, %v4172_v40  ;;  %v4196_v14 = vsub.f32 %v3669_v48, %v1829_v13  ;;  %v4199_v28 = vsub.f32 %v3672_v49, %v1829_v13  ;;  %v2806_v48 = vld [vmem:[%s5100_s2 + $0x348] sm:$0xf]  ;;  %v3015_v49 = vld [vmem:[%s5100_s2 + $0x354] sm:$0xf0] }
  0xb9   : > { %v4175_v46 = vsub.f32 %v3637_v30, %v1828_v0  ;;  %v4178_v2 = vsub.f32 %v3640_v31, %v1828_v0  ;;  %v1177_v11 = vadd.f32 %v1176_v45, %v1138_v33  ;;  %1302 = vmatmul.bf16.gmra.mxu0 %v3799_v44  ;;  %v2678_v30 = vld [vmem:[%s5100_s2 + $0x248] sm:$0xf]  ;;  %v2983_v31 = vld [vmem:[%s5100_s2 + $0x254] sm:$0xf0]  ;;  %1341 = vmatmul.bf16.gmra.mxu1 %v3804_v54 }
  0xba   : > { %5150 = vst [vmem:[#allocation24_spill] sm:$0xff] %v4196_v14  ;;  %v1912_v17 = vadd.f32 %v1878_v24, %v1877_v23  ;;  %1380 = vmatmul.bf16.gmra.mxu2 %v3806_v55  ;;  %1419 = vmatmul.bf16.gmra.mxu3 %v3808_v56  ;;  %v2679_v18 = vor.u32 %v2983_v31, %v2678_v30  ;;  %v2550_v33 = vld [vmem:[%s5100_s2 + $0x148] sm:$0xf] }
  0xbb   : > { %5149 = vst [vmem:[#allocation23_spill] sm:$0xff] %v4175_v46  ;;  %v1873_v22 = vmul.f32 %v4175_v46, %v4175_v46  ;;  %v1874_v7 = vmul.f32 %v4178_v2, %v4178_v2  ;;  %v2423_v0 = vor.u32 %v2919_v21, %v2422_v12  ;;  %v2807_v13 = vor.u32 %v3015_v49, %v2806_v48  ;;  %v1215_v24 = vpop.f32.mrf.mxu2  ;;  %v2662_v49 = vld [vmem:[%s5100_s2 + $0x228] sm:$0xf] }
  0xbc   : > { %1523 = vmatpush.bf16.msra.mxu2 %v2679_v18  ;;  %v2551_v23 = vor.u32 %v2951_v41, %v2550_v33  ;;  %v1216_v31 = vadd.f32 %v1215_v24, %v1177_v11  ;;  %v1178_v12 = vpop.f32.mrf.mxu1  ;;  %v1875_v21 = vmul.f32 %v4196_v14, %v4196_v14  ;;  %v2406_v11 = vld [vmem:[%s5100_s2 + $0x28] sm:$0xf]  ;;  %v3011_v18 = vld [vmem:[%s5100_s2 + $0x334] sm:$0xf0]  ;;  %v2993_v14 = vld [vmem:[%s5100_s2 + $0x2ac] sm:$0xf] }
  0xbd   : > { %v1906_v45 = vadd.f32 %v1874_v7, %v1873_v22  ;;  %1445 = vmatpush.bf16.msra.mxu0 %v2423_v0  ;;  %v1254_v46 = vpop.f32.mrf.mxu3  ;;  %v1876_v22 = vmul.f32 %v4199_v28, %v4199_v28  ;;  %1562 = vmatpush.bf16.msra.mxu3 %v2807_v13 }
  0xbe   : > { %v1139_v59 = vpop.f32.mrf.mxu0  ;;  %1913 = vadd.xlane.f32.xlu2 %v1912_v17  ;;  %1484 = vmatpush.bf16.msra.mxu1 %v2551_v23  ;;  %v4228_v48 = vadd.f32 %v1254_v46, %v1216_v31  ;;  %v2915_v17 = vld [vmem:[%s5100_s2 + $0x34] sm:$0xf0]  ;;  %v2790_v46 = vld [vmem:[%s5100_s2 + $0x328] sm:$0xf] }
  0xbf   : > { %1907 = vadd.xlane.f32.xlu0 %v1906_v45  ;;  %v1140_v30 = vadd.f32 %v1139_v59, %v4143_v62  ;;  %1901 = vadd.xlane.f32.xlu1 %v1900_v57  ;;  %v2979_v59 = vld [vmem:[%s5100_s2 + $0x234] sm:$0xf0]  ;;  %v1909_v0 = vadd.f32 %v1876_v22, %v1875_v21  ;;  %v2407_v33 = vor.u32 %v2915_v17, %v2406_v11  ;;  %v2534_v21 = vld [vmem:[%s5100_s2 + $0x128] sm:$0xf] }
  0xc0   : > { %5151 = vst [vmem:[#allocation25_spill] sm:$0xff] %v4228_v48  ;;  %v2663_v57 = vor.u32 %v2979_v59, %v2662_v49  ;;  %v2791_v41 = vor.u32 %v3011_v18, %v2790_v46  ;;  %v2947_v22 = vld [vmem:[%s5100_s2 + $0x134] sm:$0xf0] }
  0xc1   : > { %v1179_v7 = vadd.f32 %v1178_v12, %v1140_v30  ;;  %1446 = vmatpush.bf16.msra.mxu0 %v2407_v33  ;;  %v2535_v59 = vor.u32 %v2947_v22, %v2534_v21  ;;  %v2518_v22 = vld [vmem:[%s5100_s2 + $0x108] sm:$0xf] }
  0xc2   : > { %1524 = vmatpush.bf16.msra.mxu2 %v2663_v57  ;;  %1563 = vmatpush.bf16.msra.mxu3 %v2791_v41  ;;  %v2646_v41 = vld [vmem:[%s5100_s2 + $0x208] sm:$0xf] }
  0xc3   : > { %v1217_v13 = vpop.f32.mrf.mxu2  ;;  %1485 = vmatpush.bf16.msra.mxu1 %v2535_v59  ;;  %v2943_v59 = vld [vmem:[%s5100_s2 + $0x114] sm:$0xf0] }
  0xc4   : > { %v1218_v30 = vadd.f32 %v1217_v13, %v1179_v7  ;;  %v1181_v31 = vpop.f32.mrf.mxu1  ;;  %v2390_v13 = vld [vmem:[%s5100_s2 + $0x8] sm:$0xf] }
  0xc5   : > { %v1256_v23 = vpop.f32.mrf.mxu3 }
  0xc6   : > { %v1142_v45 = vpop.f32.mrf.mxu0  ;;  %v4250_v49 = vadd.f32 %v1256_v23, %v1218_v30  ;;  %v2774_v30 = vld [vmem:[%s5100_s2 + $0x308] sm:$0xf] }
  0xc7   : > { %v1143_v24 = vadd.f32 %v1142_v45, %v4143_v62  ;;  %1910 = vadd.xlane.f32.xlu1 %v1909_v0  ;;  %v2975_v45 = vld [vmem:[%s5100_s2 + $0x214] sm:$0xf0] }
  0xc8   : > { %5152 = vst [vmem:[#allocation26_spill] sm:$0xff] %v4250_v49  ;;  %v2647_v23 = vor.u32 %v2975_v45, %v2646_v41 }
  0xc9   : > { %v1182_v12 = vadd.f32 %v1181_v31, %v1143_v24  ;;  %1307 = vmatmul.bf16.gmra.mxu0 %v3849_v36  ;;  %1346 = vmatmul.bf16.gmra.mxu1 %v3854_v43  ;;  %v2911_v24 = vld [vmem:[%s5100_s2 + $0x14] sm:$0xf0] }
  0xca   : > { %1385 = vmatmul.bf16.gmra.mxu2 %v3856_v47  ;;  %1424 = vmatmul.bf16.gmra.mxu3 %v3858_v50  ;;  %v3007_v31 = vld [vmem:[%s5100_s2 + $0x314] sm:$0xf0] }
  0xcb   : > { %v1220_v11 = vpop.f32.mrf.mxu2  ;;  %v2775_v21 = vor.u32 %v3007_v31, %v2774_v30  ;;  %1525 = vmatpush.bf16.msra.mxu2 %v2647_v23  ;;  %v3001_v23 = vld [vmem:[%s5100_s2 + $0x2ec] sm:$0xf]  ;;  %v2504_v31 = vld [vmem:[%s5100_s2 + $0xf8] sm:$0xf0] }
  0xcc   : > { %v1221_v46 = vadd.f32 %v1220_v11, %v1182_v12  ;;  %v1183_v18 = vpop.f32.mrf.mxu1  ;;  %v2391_v12 = vor.u32 %v2911_v24, %v2390_v13  ;;  %v2937_v24 = vld [vmem:[%s5100_s2 + $0xec] sm:$0xf] }
  0xcd   : > { %v1259_v57 = vpop.f32.mrf.mxu3  ;;  %1564 = vmatpush.bf16.msra.mxu3 %v2775_v21  ;;  %v2888_v21 = vld [vmem:[%s5100_s2 + $0x3f8] sm:$0xf0] }
  0xce   : > { %v1144_v7 = vpop.f32.mrf.mxu0  ;;  %v4262_v33 = vadd.f32 %v1259_v57, %v1221_v46  ;;  %1447 = vmatpush.bf16.msra.mxu0 %v2391_v12  ;;  %v3033_v12 = vld [vmem:[%s5100_s2 + $0x3ec] sm:$0xf] }
  0xcf   : > { %v1145_v17 = vadd.f32 %v1144_v7, %v4143_v62  ;;  %v2519_v7 = vor.u32 %v2943_v59, %v2518_v22  ;;  %v2507_v59 = vor.u32 %v2937_v24, %v2504_v31  ;;  %v2632_v24 = vld [vmem:[%s5100_s2 + $0x1f8] sm:$0xf0] }
  0xd0   : > { %5153 = vst [vmem:[#allocation27_spill] sm:$0xff] %v4262_v33  ;;  %v2824_v33 = vld [vmem:[%s5100_s2 + $0x378] sm:$0xf0] }
  0xd1   : > { %v1184_v0 = vadd.f32 %v1183_v18, %v1145_v17  ;;  %1486 = vmatpush.bf16.msra.mxu1 %v2519_v7  ;;  %v2891_v7 = vor.u32 %v3033_v12, %v2888_v21 }
  0xd2   : > { %1596 = vmatpush.bf16.msrb.mxu0 %v2507_v59 }
  0xd3   : > { %v1222_v57 = vpop.f32.mrf.mxu2  ;;  %1713 = vmatpush.bf16.msrb.mxu3 %v2891_v7 }
  0xd4   : > { %v1223_v18 = vadd.f32 %v1222_v57, %v1184_v0  ;;  %v1186_v41 = vpop.f32.mrf.mxu1  ;;  %v2760_v0 = vld [vmem:[%s5100_s2 + $0x2f8] sm:$0xf0] }
  0xd5   : > { %v1261_v17 = vpop.f32.mrf.mxu3  ;;  %v2763_v30 = vor.u32 %v3001_v23, %v2760_v0  ;;  %v2969_v0 = vld [vmem:[%s5100_s2 + $0x1ec] sm:$0xf] }
  0xd6   : > { %v1147_v11 = vpop.f32.mrf.mxu0  ;;  %v4290_v13 = vadd.f32 %v1261_v17, %v1223_v18  ;;  %v2635_v31 = vor.u32 %v2969_v0, %v2632_v24  ;;  %v3029_v0 = vld [vmem:[%s5100_s2 + $0x3cc] sm:$0xf]  ;;  %v2872_v24 = vld [vmem:[%s5100_s2 + $0x3d8] sm:$0xf0] }
  0xd7   : > { %v1148_v46 = vadd.f32 %v1147_v11, %v4143_v62  ;;  %1674 = vmatpush.bf16.msrb.mxu2 %v2763_v30 }
  0xd8   : > { %5154 = vst [vmem:[#allocation28_spill] sm:$0xff] %v4290_v13  ;;  %1635 = vmatpush.bf16.msrb.mxu1 %v2635_v31 }
  0xd9   : > { %v1187_v45 = vadd.f32 %v1186_v41, %v1148_v46  ;;  %1312 = vmatmul.bf16.gmra.mxu0 %v3893_v29  ;;  %1351 = vmatmul.bf16.gmra.mxu1 %v3898_v37 }
  0xda   : > { %1390 = vmatmul.bf16.gmra.mxu2 %v3900_v38  ;;  %1429 = vmatmul.bf16.gmra.mxu3 %v3902_v42 }
  0xdb   : > { %v1225_v11 = vpop.f32.mrf.mxu2 }
  0xdc   : > { %v1226_v46 = vadd.f32 %v1225_v11, %v1187_v45  ;;  %v1188_v18 = vpop.f32.mrf.mxu1 }
  0xdd   : > { %v1264_v57 = vpop.f32.mrf.mxu3 }
  0xde   : > { %v1149_v22 = vpop.f32.mrf.mxu0  ;;  %v4314_v23 = vadd.f32 %v1264_v57, %v1226_v46  ;;  %v2997_v57 = vld [vmem:[%s5100_s2 + $0x2cc] sm:$0xf] }
  0xdf   : > { %v1150_v17 = vadd.f32 %v1149_v22, %v4143_v62  ;;  %v2933_v46 = vld [vmem:[%s5100_s2 + $0xcc] sm:$0xf] }
  0xe0   : > { %5155 = vst [vmem:[#allocation29_spill] sm:$0xff] %v4314_v23 }
  0xe1   : > { %v1189_v41 = vadd.f32 %v1188_v18, %v1150_v17  ;;  %v2744_v17 = vld [vmem:[%s5100_s2 + $0x2d8] sm:$0xf0] }
  0xe2   : > { %v2747_v18 = vor.u32 %v2997_v57, %v2744_v17 }
  0xe3   : > { %v1227_v21 = vpop.f32.mrf.mxu2 }
  0xe4   : > { %v1228_v22 = vadd.f32 %v1227_v21, %v1189_v41  ;;  %v1191_v59 = vpop.f32.mrf.mxu1  ;;  %v2488_v41 = vld [vmem:[%s5100_s2 + $0xd8] sm:$0xf0]  ;;  %v2965_v21 = vld [vmem:[%s5100_s2 + $0x1cc] sm:$0xf]  ;;  %1675 = vmatpush.bf16.msrb.mxu2 %v2747_v18 }
  0xe5   : > { %v1266_v30 = vpop.f32.mrf.mxu3  ;;  %v2491_v31 = vor.u32 %v2933_v46, %v2488_v41  ;;  %v2728_v18 = vld [vmem:[%s5100_s2 + $0x2b8] sm:$0xf0] }
  0xe6   : > { %v1152_v12 = vpop.f32.mrf.mxu0  ;;  %v4324_v11 = vadd.f32 %v1266_v30, %v1228_v22  ;;  %v2616_v30 = vld [vmem:[%s5100_s2 + $0x1d8] sm:$0xf0] }
  0xe7   : > { %v1153_v45 = vadd.f32 %v1152_v12, %v4143_v62  ;;  %v2875_v12 = vor.u32 %v3029_v0, %v2872_v24  ;;  %1597 = vmatpush.bf16.msrb.mxu0 %v2491_v31  ;;  %v2731_v31 = vor.u32 %v2993_v14, %v2728_v18 }
  0xe8   : > { %5156 = vst [vmem:[#allocation30_spill] sm:$0xff] %v4324_v11 }
  0xe9   : > { %v1192_v7 = vadd.f32 %v1191_v59, %v1153_v45  ;;  %1317 = vmatmul.bf16.gmra.mxu0 %v3937_v34  ;;  %1356 = vmatmul.bf16.gmra.mxu1 %v3942_v3  ;;  %v2619_v45 = vor.u32 %v2965_v21, %v2616_v30 }
  0xea   : > { %1395 = vmatmul.bf16.gmra.mxu2 %v3944_v5  ;;  %1434 = vmatmul.bf16.gmra.mxu3 %v3946_v6 }
  0xeb   : > { %1714 = vmatpush.bf16.msrb.mxu3 %v2875_v12  ;;  %v1230_v59 = vpop.f32.mrf.mxu2  ;;  %1636 = vmatpush.bf16.msrb.mxu1 %v2619_v45 }
  0xec   : > { %v1231_v46 = vadd.f32 %v1230_v59, %v1192_v7  ;;  %v1193_v41 = vpop.f32.mrf.mxu1  ;;  %1676 = vmatpush.bf16.msrb.mxu2 %v2731_v31 }
  0xed   : > { %v1269_v57 = vpop.f32.mrf.mxu3 }
  0xee   : > { %v1154_v22 = vpop.f32.mrf.mxu0  ;;  %v4354_v24 = vadd.f32 %v1269_v57, %v1231_v46 }
  0xef   : > { %v1155_v17 = vadd.f32 %v1154_v22, %v4143_v62 }
  0xf0   : > { %5157 = vst [vmem:[#allocation31_spill] sm:$0xff] %v4354_v24 }
  0xf1   : > { %v1194_v0 = vadd.f32 %v1193_v41, %v1155_v17 }
  0xf3   : > { %v1232_v21 = vpop.f32.mrf.mxu2 }
  0xf4   : > { %v1233_v7 = vadd.f32 %v1232_v21, %v1194_v0  ;;  %v1196_v22 = vpop.f32.mrf.mxu1 }
  0xf5   : > { %v1271_v30 = vpop.f32.mrf.mxu3 }
  0xf6   : > { %v1157_v12 = vpop.f32.mrf.mxu0  ;;  %v4364_v57 = vadd.f32 %v1271_v30, %v1233_v7 }
  0xf7   : > { %v1158_v45 = vadd.f32 %v1157_v12, %v4143_v62 }
  0xf8   : > { %5158 = vst [vmem:[#allocation32_spill] sm:$0xff] %v4364_v57 }
  0xf9   : > { %v1197_v59 = vadd.f32 %v1196_v22, %v1158_v45  ;;  %1448 = vmatmul.bf16.vlgmr.msra.gmra.mxu0 %v3586_v63  ;;  %1487 = vmatmul.bf16.vlgmr.msra.gmra.mxu1 %v3600_v15 }
  0xfa   : > { %1526 = vmatmul.bf16.vlgmr.msra.gmra.mxu2 %v3608_v19  ;;  %1565 = vmatmul.bf16.vlgmr.msra.gmra.mxu3 %v3610_v20 }
  0xfb   : > { %v1235_v17 = vpop.f32.mrf.mxu2 }
  0xfc   : > { %v1236_v18 = vadd.f32 %v1235_v17, %v1197_v59  ;;  %v1198_v31 = vpop.f32.mrf.mxu1  ;;  %v2929_v59 = vld [vmem:[%s5100_s2 + $0xac] sm:$0xf] }
  0xfd   : > { %v1274_v46 = vpop.f32.mrf.mxu3 }
  0xfe   : > { %v1159_v14 = vpop.f32.mrf.mxu0  ;;  %v4370_v12 = vadd.f32 %v1274_v46, %v1236_v18  ;;  %v2961_v18 = vld [vmem:[%s5100_s2 + $0x1ac] sm:$0xf] }
  0xff   : > { %v1160_v41 = vadd.f32 %v1159_v14, %v4143_v62  ;;  %v2472_v14 = vld [vmem:[%s5100_s2 + $0xb8] sm:$0xf0] }
 0x100   : > { %5159 = vst [vmem:[#allocation33_spill] sm:$0xff] %v4370_v12  ;;  %v2475_v46 = vor.u32 %v2929_v59, %v2472_v14  ;;  %v4401_v12 = vperm.slane %v4121_v58, 1  ;;  %v2925_v58 = vld [vmem:[%s5100_s2 + $0x8c] sm:$0xf] }
 0x101   : > { %v1199_v0 = vadd.f32 %v1198_v31, %v1160_v41  ;;  %v2856_v41 = vld [vmem:[%s5100_s2 + $0x3b8] sm:$0xf0] }
 0x102   : > { %v2600_v31 = vld [vmem:[%s5100_s2 + $0x1b8] sm:$0xf0]  ;;  %1598 = vmatpush.bf16.msrb.mxu0 %v2475_v46 }
 0x103   : > { %v1237_v45 = vpop.f32.mrf.mxu2 }
 0x104   : > { %v1238_v22 = vadd.f32 %v1237_v45, %v1199_v0  ;;  %v1201_v57 = vpop.f32.mrf.mxu1 }
 0x105   : > { %v1276_v30 = vpop.f32.mrf.mxu3 }
 0x106   : > { %v1162_v21 = vpop.f32.mrf.mxu0  ;;  %v4374_v24 = vadd.f32 %v1276_v30, %v1238_v22 }
 0x107   : > { %v1163_v7 = vadd.f32 %v1162_v21, %v4143_v62 }
 0x108   : > { %5160 = vst [vmem:[#allocation34_spill] sm:$0xff] %v4374_v24 }
 0x109   : > { %v1202_v60 = vadd.f32 %v1201_v57, %v1163_v7  ;;  %1453 = vmatmul.bf16.gmra.mxu0 %v3714_v32  ;;  %1492 = vmatmul.bf16.gmra.mxu1 %v3730_v39  ;;  %v3025_v57 = vld [vmem:[%s5100_s2 + $0x3ac] sm:$0xf]  ;;  %v2603_v7 = vor.u32 %v2961_v18, %v2600_v31 }
 0x10a   : > { %1531 = vmatmul.bf16.gmra.mxu2 %v3741_v51  ;;  %1570 = vmatmul.bf16.gmra.mxu3 %v3743_v52  ;;  %v2859_v30 = vor.u32 %v3025_v57, %v2856_v41  ;;  %v2712_v57 = vld [vmem:[%s5100_s2 + $0x298] sm:$0xf0] }
 0x10b   : > { %v1240_v0 = vpop.f32.mrf.mxu2  ;;  %1637 = vmatpush.bf16.msrb.mxu1 %v2603_v7  ;;  %v2840_v41 = vld [vmem:[%s5100_s2 + $0x398] sm:$0xf0] }
 0x10c   : > { %v1241_v22 = vadd.f32 %v1240_v0, %v1202_v60  ;;  %v1203_v59 = vpop.f32.mrf.mxu1  ;;  %1715 = vmatpush.bf16.msrb.mxu3 %v2859_v30  ;;  %v2989_v60 = vld [vmem:[%s5100_s2 + $0x28c] sm:$0xf]  ;;  %v2584_v30 = vld [vmem:[%s5100_s2 + $0x198] sm:$0xf0] }
 0x10d   : > { %v1279_v21 = vpop.f32.mrf.mxu3  ;;  %v2715_v46 = vor.u32 %v2989_v60, %v2712_v57 }
 0x10e   : > { %v1164_v17 = vpop.f32.mrf.mxu0  ;;  %v4398_v24 = vadd.f32 %v1279_v21, %v1241_v22 }
 0x10f   : > { %v1165_v45 = vadd.f32 %v1164_v17, %v4143_v62  ;;  %1677 = vmatpush.bf16.msrb.mxu2 %v2715_v46  ;;  %v2696_v46 = vld [vmem:[%s5100_s2 + $0x278] sm:$0xf0] }
 0x110   : > { %5161 = vst [vmem:[#allocation35_spill] sm:$0xff] %v4398_v24  ;;  %v3017_v24 = vld [vmem:[%s5100_s2 + $0x36c] sm:$0xf] }
 0x111   : > { %v1204_v14 = vadd.f32 %v1203_v59, %v1165_v45  ;;  %v2957_v45 = vld [vmem:[%s5100_s2 + $0x18c] sm:$0xf] }
 0x112   : > { %v2587_v59 = vor.u32 %v2957_v45, %v2584_v30 }
 0x113   : > { %v1242_v11 = vpop.f32.mrf.mxu2 }
 0x114   : > { %v1243_v13 = vadd.f32 %v1242_v11, %v1204_v14  ;;  %v1332_v62 = vpop.f32.mrf.mxu1  ;;  %v3021_v11 = vld [vmem:[%s5100_s2 + $0x38c] sm:$0xf]  ;;  %1638 = vmatpush.bf16.msrb.mxu1 %v2587_v59 }
 0x115   : > { %v1281_v23 = vpop.f32.mrf.mxu3  ;;  %v2843_v21 = vor.u32 %v3021_v11, %v2840_v41 }
 0x116   : > { %v1293_v10 = vpop.f32.mrf.mxu0  ;;  %v4423_v0 = vadd.f32 %v1281_v23, %v1243_v13 }
 0x117   : > { %v1294_v53 = vadd.f32 %v1293_v10, %v4401_v12  ;;  %v2456_v10 = vld [vmem:[%s5100_s2 + $0x98] sm:$0xf0]  ;;  %1716 = vmatpush.bf16.msrb.mxu3 %v2843_v21 }
 0x118   : > { %v1887_v18 = vpop.xlane.xlu2 %1886  ;;  %5162 = vst [vmem:[#allocation36_spill] sm:$0xff] %v4423_v0 }
 0x119   : > { %v1333_v17 = vadd.f32 %v1332_v62, %v1294_v53  ;;  %1458 = vmatmul.bf16.gmra.mxu0 %v3799_v44  ;;  %v2459_v53 = vor.u32 %v2925_v58, %v2456_v10  ;;  %v1917_v7 = vmul.f32 %v1887_v18, %v4002_v35  ;;  %1497 = vmatmul.bf16.gmra.mxu1 %v3804_v54  ;;  %v2985_v58 = vld [vmem:[%s5100_s2 + $0x26c] sm:$0xf] }
 0x11a   : > { %v1881_v31 = vpop.xlane.xlu0 %1880  ;;  %1536 = vmatmul.bf16.gmra.mxu2 %v3806_v55  ;;  %1575 = vmatmul.bf16.gmra.mxu3 %v3808_v56  ;;  %v2699_v41 = vor.u32 %v2985_v58, %v2696_v46 }
 0x11b   : > { %v1915_v22 = vmul.f32 %v1881_v31, %v4002_v35  ;;  %v4436_v13 = vadd.f32 1e-05, %v1917_v7  ;;  %1599 = vmatpush.bf16.msrb.mxu0 %v2459_v53  ;;  %v1371_v62 = vpop.f32.mrf.mxu2 }
 0x11c   : > { %v1372_v10 = vadd.f32 %v1371_v62, %v1333_v17  ;;  %v1334_v11 = vpop.f32.mrf.mxu1  ;;  %1678 = vmatpush.bf16.msrb.mxu2 %v2699_v41 }
 0x11d   : > { %v4438_v23 = vadd.f32 1e-05, %v1915_v22  ;;  %3133 = vrsqrt.f32 %v4436_v13  ;;  %v1410_v60 = vpop.f32.mrf.mxu3  ;;  %vm1965_vm6 = vweird.f32 %v4436_v13 }
 0x11e   : > { %v1295_v14 = vpop.f32.mrf.mxu0  ;;  %v4449_v21 = vadd.f32 %v1410_v60, %v1372_v10 }
 0x11f   : > { %v1296_v57 = vadd.f32 %v1295_v14, %v4401_v12  ;;  %3135 = vrsqrt.f32 %v4438_v23  ;;  %vm1945_vm1 = vweird.f32 %v4438_v23 }
 0x121   : > { %v1335_v18 = vadd.f32 %v1334_v11, %v1296_v57  ;;  %v1896_v31 = vpop.xlane.xlu2 %1895 }
 0x122   : > { %v1890_v53 = vpop.xlane.xlu0 %1889  ;;  %v1920_v45 = vmul.f32 %v1896_v31, %v4002_v35  ;;  %v1884_v30 = vpop.xlane.xlu1 %1883 }
 0x123   : > { %v1918_v7 = vmul.f32 %v1890_v53, %v4002_v35  ;;  %v1916_v22 = vmul.f32 %v1884_v30, %v4002_v35  ;;  %v4454_v59 = vpop.eup %3133  ;;  %v1373_v10 = vpop.f32.mrf.mxu2 }
 0x124   : > { %v4458_v62 = vadd.f32 1e-05, %v1920_v45  ;;  %v1960_v60 = vmul.f32 %v4454_v59, %v4436_v13  ;;  %v1374_v53 = vadd.f32 %v1373_v10, %v1335_v18  ;;  %vm1966_vm7 = vweird.f32 %v4454_v59 }
 0x125   : > { %v4456_v14 = vadd.f32 1e-05, %v1918_v7  ;;  %v3136_v17 = vpop.eup %3135  ;;  %v4460_v57 = vadd.f32 1e-05, %v1916_v22  ;;  %v1412_v11 = vpop.f32.mrf.mxu3  ;;  %v2921_v7 = vld [vmem:[%s5100_s2 + $0x6c] sm:$0xf]  ;;  %vm4548_vm9 = vmor %vm1965_vm6, %vm1966_vm7 }
 0x126   : > { %v1298_v58 = vpop.f32.mrf.mxu0  ;;  %v1940_v46 = vmul.f32 %v3136_v17, %v4438_v23  ;;  %v1337_v41 = vpop.f32.mrf.mxu1  ;;  %vm1946_vm2 = vweird.f32 %v3136_v17  ;;  %v2440_v22 = vld [vmem:[%s5100_s2 + $0x78] sm:$0xf0]  ;;  %v1961_v18 = vmul.f32 %v4454_v59, %v1960_v60  ;;  %v4479_v0 = vadd.f32 %v1412_v11, %v1374_v53 }
 0x127   : > { %3137 = vrsqrt.f32 %v4460_v57  ;;  %v1299_v45 = vadd.f32 %v1298_v58, %v4401_v12  ;;  %v2443_v60 = vor.u32 %v2921_v7, %v2440_v22  ;;  %vm4494_vm3 = vmor %vm1945_vm1, %vm1946_vm2  ;;  %vm1955_vm4 = vweird.f32 %v4460_v57 }
 0x128   : > { %v1941_v31 = vmul.f32 %v3136_v17, %v1940_v46  ;;  %3139 = vrsqrt.f32 %v4456_v14  ;;  %vm1975_vm10 = vweird.f32 %v4456_v14  ;;  %vm1995_vm15 = vweird.f32 %v4458_v62 }
 0x129   : > { %1463 = vmatmul.bf16.gmra.mxu0 %v3849_v36  ;;  %3141 = vrsqrt.f32 %v4458_v62  ;;  %1502 = vmatmul.bf16.gmra.mxu1 %v3854_v43  ;;  %v1338_v49 = vadd.f32 %v1337_v41, %v1299_v45  ;;  %v1962_v45 = vmul.f32 0.5, %v1961_v18 }
 0x12a   : > { %v1899_v30 = vpop.xlane.xlu0 %1898  ;;  %v1942_v46 = vmul.f32 0.5, %v1941_v31  ;;  %v1893_v58 = vpop.xlane.xlu1 %1892  ;;  %1541 = vmatmul.bf16.gmra.mxu2 %v3856_v47  ;;  %1580 = vmatmul.bf16.gmra.mxu3 %v3858_v50  ;;  %v2827_v31 = vor.u32 %v3017_v24, %v2824_v33 }
 0x12b   : > { %v1921_v10 = vmul.f32 %v1899_v30, %v4002_v35  ;;  %v1919_v36 = vmul.f32 %v1893_v58, %v4002_v35  ;;  %1600 = vmatpush.bf16.msrb.mxu0 %v2443_v60  ;;  %v1376_v24 = vpop.f32.mrf.mxu2 }
 0x12c   : > { %v1943_v11 = vsub.f32 1.5, %v1942_v46  ;;  %1717 = vmatpush.bf16.msrb.mxu3 %v2827_v31  ;;  %v1963_v31 = vsub.f32 1.5, %v1962_v45 }
 0x12d   : > { %v3138_v53 = vpop.eup %3137  ;;  %v4498_v43 = vadd.f32 1e-05, %v1919_v36  ;;  %v4505_v33 = vadd.f32 1e-05, %v1921_v10  ;;  %v1415_v23 = vpop.f32.mrf.mxu3 }
 0x12e   : > { %v4500_v58 = vpop.f32.mrf.mxu0  ;;  %v4502_v41 = vpop.eup %3139  ;;  %v1950_v7 = vmul.f32 %v3138_v53, %v4460_v57  ;;  %v1944_v22 = vmul.f32 %v3136_v17, %v1943_v11  ;;  %vm1956_vm5 = vweird.f32 %v3138_v53 }
 0x12f   : > { %v4507_v46 = vpop.eup %3141  ;;  %v1970_v36 = vmul.f32 %v4502_v41, %v4456_v14  ;;  %v4511_v50 = vpop.f32.mrf.mxu1  ;;  %3143 = vrsqrt.f32 %v4498_v43  ;;  %vm1957_vm8 = vmor %vm1955_vm4, %vm1956_vm5  ;;  %vm1976_vm11 = vweird.f32 %v4502_v41  ;;  %v2680_v14 = vld [vmem:[%s5100_s2 + $0x258] sm:$0xf0]  ;;  %vm1985_vm13 = vweird.f32 %v4498_v43 }
 0x130   : > { %v1951_v60 = vmul.f32 %v3138_v53, %v1950_v7  ;;  %v4515_v47 = vsel %vm4494_vm3, %v3136_v17, %v1944_v22  ;;  %v1905_v11 = vpop.xlane.xlu2 %1904  ;;  %3145 = vrsqrt.f32 %v4505_v33  ;;  %v1990_v17 = vmul.f32 %v4507_v46, %v4458_v62  ;;  %vm4585_vm12 = vmor %vm1975_vm10, %vm1976_vm11  ;;  %v2792_v62 = vld [vmem:[%s5100_s2 + $0x338] sm:$0xf0] }
 0x131   : > { %5165 = vst [vmem:[#allocation37_spill] sm:$0xff] %v4515_v47  ;;  %v1971_v18 = vmul.f32 %v4502_v41, %v1970_v36  ;;  %v2060_v10 = vmul.f32 %v4515_v47, %v4018_v16  ;;  %v1923_v56 = vmul.f32 %v1905_v11, %v4002_v35  ;;  %v1377_v16 = vadd.f32 %v1376_v24, %v1338_v49 }
 0x132   : > { %v1952_v9 = vmul.f32 0.5, %v1951_v60  ;;  %v1902_v7 = vpop.xlane.xlu1 %1901  ;;  %v1964_v24 = vmul.f32 %v4454_v59, %v1963_v31  ;;  %vm1996_vm0 = vweird.f32 %v4507_v46  ;;  %vm2005_vm3 = vweird.f32 %v4505_v33 }
 0x133   : > { %v1972_v30 = vmul.f32 0.5, %v1971_v18  ;;  %v4526_v22 = vmul.f32 %v2060_v10, %v4449_v21  ;;  %v1922_v48 = vmul.f32 %v1902_v7, %v4002_v35  ;;  %v1378_v10 = vpop.f32.mrf.mxu2  ;;  %vm4671_vm2 = vmor %vm1995_vm15, %vm1996_vm0 }
 0x134   : > { %v1953_v36 = vsub.f32 1.5, %v1952_v9  ;;  %v1991_v9 = vmul.f32 %v4507_v46, %v1990_v17 }
 0x135   : > { %5166 = vst [vmem:[#allocation38_spill] sm:$0xff] %v4526_v22  ;;  %v4534_v60 = vpop.eup %3143  ;;  %v1973_v47 = vsub.f32 1.5, %v1972_v30  ;;  %v4536_v21 = vadd.f32 1e-05, %v1922_v48  ;;  %v4538_v7 = vpop.f32.mrf.mxu3  ;;  %v4552_v48 = vadd.f32 1e-05, %v1923_v56 }
 0x136   : > { %v1303_v45 = vpop.f32.mrf.mxu0  ;;  %v1954_v18 = vmul.f32 %v3138_v53, %v1953_v36  ;;  %v1980_v49 = vmul.f32 %v4534_v60, %v4498_v43  ;;  %v4544_v57 = vpop.eup %3145  ;;  %v2953_v56 = vld [vmem:[%s5100_s2 + $0x16c] sm:$0xf]  ;;  %v1992_v22 = vmul.f32 0.5, %v1991_v9  ;;  %vm1986_vm14 = vweird.f32 %v4534_v60 }
 0x137   : > { %v1342_v11 = vpop.f32.mrf.mxu1  ;;  %3147 = vrsqrt.f32 %v4536_v21  ;;  %v1974_v17 = vmul.f32 %v4502_v41, %v1973_v47  ;;  %v2981_v36 = vld [vmem:[%s5100_s2 + $0x24c] sm:$0xf]  ;;  %vm4655_vm1 = vmor %vm1985_vm13, %vm1986_vm14  ;;  %vm2006_vm4 = vweird.f32 %v4544_v57  ;;  %vm2015_vm6 = vweird.f32 %v4536_v21 }
 0x138   : > { %v4554_v30 = vsel %vm1957_vm8, %v3138_v53, %v1954_v18  ;;  %v1981_v31 = vmul.f32 %v4534_v60, %v1980_v49  ;;  %v2568_v53 = vld [vmem:[%s5100_s2 + $0x178] sm:$0xf0]  ;;  %v1416_v18 = vadd.f32 %v1415_v23, %v1377_v16  ;;  %v2000_v49 = vmul.f32 %v4544_v57, %v4505_v33  ;;  %v5173_v23 = vld [vmem:[#allocation13_spill] sm:$0xff]  ;;  %vm4744_vm5 = vmor %vm2005_vm3, %vm2006_vm4  ;;  %v1914_v33 = vpop.xlane.xlu2 %1913 }
 0x139   : > { %1468 = vmatmul.bf16.gmra.mxu0 %v3893_v29  ;;  %v2062_v13 = vmul.f32 %v4554_v30, %v4066_v1  ;;  %1507 = vmatmul.bf16.gmra.mxu1 %v3898_v37  ;;  %v4579_v1 = vsel %vm4548_vm9, %v4454_v59, %v1964_v24  ;;  %3149 = vrsqrt.f32 %v4552_v48  ;;  %v2571_v16 = vor.u32 %v2953_v56, %v2568_v53  ;;  %v1908_v24 = vpop.xlane.xlu0 %1907 }
 0x13a   : > { %5170 = vst [vmem:[#allocation40_spill] sm:$0xff] %v4579_v1  ;;  %1546 = vmatmul.bf16.gmra.mxu2 %v3900_v38  ;;  %1585 = vmatmul.bf16.gmra.mxu3 %v3902_v42  ;;  %v1301_v59 = vadd.f32 %v4500_v58, %v4401_v12  ;;  %v1982_v9 = vmul.f32 0.5, %v1981_v31  ;;  %v1993_v31 = vsub.f32 1.5, %v1992_v22  ;;  %v4610_v38 = vsel %vm4585_vm12, %v4502_v41, %v1974_v17  ;;  %v3013_v41 = vld [vmem:[%s5100_s2 + $0x34c] sm:$0xf] }
 0x13b   : > { %v4574_v29 = vmul.f32 %v2062_v13, %v4479_v0  ;;  %v2064_v0 = vmul.f32 %v4579_v1, %v5173_v23  ;;  %1639 = vmatpush.bf16.msrb.mxu1 %v2571_v16  ;;  %v2001_v23 = vmul.f32 %v4544_v57, %v2000_v49  ;;  %5175 = vst [vmem:[#allocation41_spill] sm:$0xff] %v4610_v38  ;;  %v2424_v49 = vld [vmem:[%s5100_s2 + $0x58] sm:$0xf0]  ;;  %vm2025_vm9 = vweird.f32 %v4552_v48 }
 0x13c   : > { %v1340_v56 = vadd.f32 %v4511_v50, %v1301_v59  ;;  %v2066_v50 = vmul.f32 %v4610_v38, %v4060_v8  ;;  %v2683_v59 = vor.u32 %v2981_v36, %v2680_v14  ;;  %v1304_v22 = vadd.f32 %v1303_v45, %v4401_v12  ;;  %v2808_v17 = vld [vmem:[%s5100_s2 + $0x358] sm:$0xf0]  ;;  %v2977_v38 = vld [vmem:[%s5100_s2 + $0x22c] sm:$0xf] }
 0x13d   : > { %5169 = vst [vmem:[#allocation39_spill] sm:$0xff] %v4574_v29  ;;  %v4600_v29 = vpop.eup %3147  ;;  %v4602_v42 = vmul.f32 %v2064_v0, %v1416_v18  ;;  %v1381_v53 = vpop.f32.mrf.mxu2  ;;  %v2917_v18 = vld [vmem:[%s5100_s2 + $0x4c] sm:$0xf]  ;;  %v1983_v47 = vsub.f32 1.5, %v1982_v9  ;;  %v1924_v45 = vmul.f32 %v1908_v24, %v4002_v35  ;;  %v2552_v36 = vld [vmem:[%s5100_s2 + $0x158] sm:$0xf0]  ;;  %v1994_v24 = vmul.f32 %v4507_v46, %v1993_v31 }
 0x13e   : > { %v1305_v13 = vpop.f32.mrf.mxu0  ;;  %v1420_v58 = vpop.f32.mrf.mxu3  ;;  %v1379_v16 = vadd.f32 %v1378_v10, %v1340_v56  ;;  %v2010_v8 = vmul.f32 %v4600_v29, %v4536_v21  ;;  %v2949_v10 = vld [vmem:[%s5100_s2 + $0x14c] sm:$0xf]  ;;  %1679 = vmatpush.bf16.msrb.mxu2 %v2683_v59  ;;  %v1343_v56 = vadd.f32 %v1342_v11, %v1304_v22  ;;  %v2427_v37 = vor.u32 %v2917_v18, %v2424_v49  ;;  %v2664_v1 = vld [vmem:[%s5100_s2 + $0x238] sm:$0xf0] }
 0x13f   : > { %5174 = vst [vmem:[#allocation13_spill] sm:$0xff] %v4602_v42  ;;  %v1344_v0 = vpop.f32.mrf.mxu1  ;;  %v4637_v14 = vpop.eup %3149  ;;  %v4643_v42 = vmul.f32 0.5, %v2001_v23  ;;  %v2811_v31 = vor.u32 %v3013_v41, %v2808_v17  ;;  %v2555_v23 = vor.u32 %v2949_v10, %v2552_v36  ;;  %v2408_v59 = vld [vmem:[%s5100_s2 + $0x38] sm:$0xf0]  ;;  %v4678_v22 = vadd.f32 1e-05, %v1924_v45 }
 0x140   : > { %v1418_v9 = vadd.f32 %v4538_v7, %v1379_v16  ;;  %v1382_v18 = vadd.f32 %v1381_v53, %v1343_v56  ;;  %v2913_v16 = vld [vmem:[%s5100_s2 + $0x2c] sm:$0xf]  ;;  %v2011_v53 = vmul.f32 %v4600_v29, %v2010_v8  ;;  %v1911_v49 = vpop.xlane.xlu1 %1910  ;;  %1601 = vmatpush.bf16.msrb.mxu0 %v2427_v37  ;;  %v1984_v41 = vmul.f32 %v4534_v60, %v1983_v47 }
 0x141   : > { %v3009_v17 = vld [vmem:[%s5100_s2 + $0x32c] sm:$0xf]  ;;  %1718 = vmatpush.bf16.msrb.mxu3 %v2811_v31  ;;  %1640 = vmatpush.bf16.msrb.mxu1 %v2555_v23  ;;  %v1306_v45 = vadd.f32 %v1305_v13, %v4401_v12  ;;  %v2667_v36 = vor.u32 %v2977_v38, %v2664_v1  ;;  %v2003_v47 = vsub.f32 1.5, %v4643_v42  ;;  %v2536_v38 = vld [vmem:[%s5100_s2 + $0x138] sm:$0xf0]  ;;  %3151 = vrsqrt.f32 %v4678_v22 }
 0x142   : > { %v4659_v11 = vmul.f32 %v2066_v50, %v1418_v9  ;;  %v2020_v50 = vmul.f32 %v4637_v14, %v4552_v48  ;;  %v1421_v8 = vadd.f32 %v1420_v58, %v1382_v18  ;;  %v4694_v56 = vsel %vm4655_vm1, %v4534_v60, %v1984_v41  ;;  %v2945_v31 = vld [vmem:[%s5100_s2 + $0x12c] sm:$0xf]  ;;  %v2648_v23 = vld [vmem:[%s5100_s2 + $0x218] sm:$0xf0] }
 0x143   : > { %v2068_v42 = vmul.f32 %v4694_v56, %v4092_v4  ;;  %v1345_v13 = vadd.f32 %v1344_v0, %v1306_v45  ;;  %1680 = vmatpush.bf16.msrb.mxu2 %v2667_v36  ;;  %v2795_v58 = vor.u32 %v3009_v17, %v2792_v62  ;;  %v4707_v60 = vsel %vm4671_vm2, %v4507_v46, %v1994_v24  ;;  %v2973_v7 = vld [vmem:[%s5100_s2 + $0x20c] sm:$0xf]  ;;  %v2392_v24 = vld [vmem:[%s5100_s2 + $0x18] sm:$0xf0] }
 0x144   : > { %5178 = vst [vmem:[#allocation42_spill] sm:$0xff] %v4659_v11  ;;  %v2411_v11 = vor.u32 %v2913_v16, %v2408_v59  ;;  %v2909_v4 = vld [vmem:[%s5100_s2 + $0xc] sm:$0xf]  ;;  %v2012_v0 = vmul.f32 0.5, %v2011_v53  ;;  %v1925_v18 = vmul.f32 %v1911_v49, %v4002_v35  ;;  %v2070_v46 = vmul.f32 %v4707_v60, %v4045_v25  ;;  %v2520_v49 = vld [vmem:[%s5100_s2 + $0x118] sm:$0xf0] }
 0x145   : > { %v1383_v37 = vpop.f32.mrf.mxu2  ;;  %v3005_v16 = vld [vmem:[%s5100_s2 + $0x30c] sm:$0xf]  ;;  %v4728_v59 = vmul.f32 %v2068_v42, %v1421_v8  ;;  %1719 = vmatpush.bf16.msrb.mxu3 %v2795_v58  ;;  %v2539_v53 = vor.u32 %v2945_v31, %v2536_v38  ;;  %v2004_v62 = vmul.f32 %v4544_v57, %v2003_v47  ;;  %v2395_v36 = vor.u32 %v2909_v4, %v2392_v24 }
 0x146   : > { %v1308_v10 = vpop.f32.mrf.mxu0  ;;  %v1422_v9 = vpop.f32.mrf.mxu3  ;;  %1602 = vmatpush.bf16.msrb.mxu0 %v2411_v11  ;;  %v1384_v43 = vadd.f32 %v1383_v37, %v1345_v13  ;;  %v2776_v11 = vld [vmem:[%s5100_s2 + $0x318] sm:$0xf0]  ;;  %v2941_v25 = vld [vmem:[%s5100_s2 + $0x10c] sm:$0xf]  ;;  %v2021_v37 = vmul.f32 %v4637_v14, %v2020_v50  ;;  %v4753_v31 = vadd.f32 1e-05, %v1925_v18  ;;  %vm2016_vm7 = vweird.f32 %v4600_v29 }
 0x147   : > { %v1347_v1 = vpop.f32.mrf.mxu1  ;;  %v1309_v41 = vadd.f32 %v1308_v10, %v4401_v12  ;;  %v2651_v10 = vor.u32 %v2973_v7, %v2648_v23  ;;  %1641 = vmatpush.bf16.msrb.mxu1 %v2539_v53  ;;  %v2779_v42 = vor.u32 %v3005_v16, %v2776_v11  ;;  %v2523_v13 = vor.u32 %v2941_v25, %v2520_v49  ;;  %v4764_v23 = vpop.eup %3151  ;;  %vm2017_vm8 = vmor %vm2015_vm6, %vm2016_vm7 }
 0x148   : > { %v1423_v8 = vadd.f32 %v1422_v9, %v1384_v43  ;;  %v2013_v58 = vsub.f32 1.5, %v2012_v0  ;;  %3153 = vrsqrt.f32 %v4753_v31  ;;  %v2022_v16 = vmul.f32 0.5, %v2021_v37 }
 0x149   : > { %1473 = vmatmul.bf16.gmra.mxu0 %v3937_v34  ;;  %1512 = vmatmul.bf16.gmra.mxu1 %v3942_v3  ;;  %v1348_v45 = vadd.f32 %v1347_v1, %v1309_v41  ;;  %v4761_v1 = vsel %vm4744_vm5, %v4544_v57, %v2004_v62  ;;  %v1926_v57 = vmul.f32 %v1914_v33, %v4002_v35  ;;  %vm2026_vm10 = vweird.f32 %v4637_v14 }
 0x14a   : > { %1551 = vmatmul.bf16.gmra.mxu2 %v3944_v5  ;;  %1590 = vmatmul.bf16.gmra.mxu3 %v3946_v6  ;;  %v4756_v47 = vmul.f32 %v2070_v46, %v1423_v8  ;;  %v2072_v18 = vmul.f32 %v4761_v1, %v4135_v61  ;;  %v2014_v43 = vmul.f32 %v4600_v29, %v2013_v58  ;;  %v2023_v11 = vsub.f32 1.5, %v2022_v16  ;;  %vm2027_vm11 = vmor %vm2025_vm9, %vm2026_vm10 }
 0x14b   : > { %1681 = vmatpush.bf16.msrb.mxu2 %v2651_v10  ;;  %1603 = vmatpush.bf16.msrb.mxu0 %v2395_v36  ;;  %v2030_v53 = vmul.f32 %v4764_v23, %v4678_v22  ;;  %v4777_v41 = vadd.f32 1e-05, %v1926_v57  ;;  %vm2035_vm12 = vweird.f32 %v4678_v22  ;;  %vm2036_vm13 = vweird.f32 %v4764_v23 }
 0x14c   : > { %1720 = vmatpush.bf16.msrb.mxu3 %v2779_v42  ;;  %1642 = vmatpush.bf16.msrb.mxu1 %v2523_v13  ;;  %v4781_v17 = vsel %vm2017_vm8, %v4600_v29, %v2014_v43  ;;  %v2024_v42 = vmul.f32 %v4637_v14, %v2023_v11  ;;  %vm2037_vm14 = vmor %vm2035_vm12, %vm2036_vm13  ;;  %vm2045_vm15 = vweird.f32 %v4753_v31 }
 0x14d   : > { %v1386_v9 = vpop.f32.mrf.mxu2  ;;  %v2031_v25 = vmul.f32 %v4764_v23, %v2030_v53  ;;  %3155 = vrsqrt.f32 %v4777_v41  ;;  %vm2055_vm2 = vweird.f32 %v4777_v41 }
 0x14e   : > { %v1310_v38 = vpop.f32.mrf.mxu0  ;;  %v1425_v7 = vpop.f32.mrf.mxu3  ;;  %v1387_v4 = vadd.f32 %v1386_v9, %v1348_v45  ;;  %v2074_v45 = vmul.f32 %v4781_v17, %v4155_v27 }
 0x14f   : > { %v1311_v50 = vadd.f32 %v1310_v38, %v4401_v12  ;;  %v1349_v24 = vpop.f32.mrf.mxu1  ;;  %v4784_v10 = vpop.eup %3153  ;;  %v2032_v38 = vmul.f32 0.5, %v2031_v25 }
 0x150   : > { %v1426_v46 = vadd.f32 %v1425_v7, %v1387_v4  ;;  %v2040_v29 = vmul.f32 %v4784_v10, %v4753_v31  ;;  %vm2046_vm0 = vweird.f32 %v4784_v10 }
 0x151   : > { %v1350_v0 = vadd.f32 %v1349_v24, %v1311_v50  ;;  %v2033_v48 = vsub.f32 1.5, %v2032_v38  ;;  %v4802_v50 = vsel %vm2027_vm11, %v4637_v14, %v2024_v42  ;;  %vm2047_vm1 = vmor %vm2045_vm15, %vm2046_vm0 }
 0x152   : > { %v4775_v61 = vmul.f32 %v2072_v18, %v1426_v46  ;;  %v2041_v58 = vmul.f32 %v4784_v10, %v2040_v29 }
 0x153   : > { %v3156_v18 = vpop.eup %3155  ;;  %v2034_v57 = vmul.f32 %v4764_v23, %v2033_v48 }
 0x154   : > { %v2042_v14 = vmul.f32 0.5, %v2041_v58  ;;  %vm2056_vm3 = vweird.f32 %v3156_v18 }
 0x155   : > { %v1388_v49 = vpop.f32.mrf.mxu2  ;;  %v4814_v11 = vsel %vm2037_vm14, %v4764_v23, %v2034_v57  ;;  %vm2057_vm4 = vmor %vm2055_vm2, %vm2056_vm3  ;;  %v5185_v57 = vld [vmem:[#allocation37_spill] sm:$0xff] }
 0x156   : > { %v1313_v21 = vpop.f32.mrf.mxu0  ;;  %v1427_v35 = vpop.f32.mrf.mxu3  ;;  %v1389_v8 = vadd.f32 %v1388_v49, %v1350_v0  ;;  %v2050_v0 = vmul.f32 %v3156_v18, %v4777_v41  ;;  %v2043_v53 = vsub.f32 1.5, %v2042_v14  ;;  %v2078_v49 = vmul.f32 %v4814_v11, %v4178_v2 }
 0x157   : > { %v1314_v62 = vadd.f32 %v1313_v21, %v4401_v12  ;;  %v1352_v36 = vpop.f32.mrf.mxu1 }
 0x158   : > { %v1428_v33 = vadd.f32 %v1427_v35, %v1389_v8  ;;  %v2051_v43 = vmul.f32 %v3156_v18, %v2050_v0  ;;  %v5184_v0 = vld [vmem:[#allocation14_spill] sm:$0xff] }
 0x159   : > { %v1353_v37 = vadd.f32 %v1352_v36, %v1314_v62  ;;  %1604 = vmatmul.bf16.vlgmr.msrb.gmra.mxu0 %v3586_v63  ;;  %1643 = vmatmul.bf16.vlgmr.msrb.gmra.mxu1 %v3600_v15  ;;  %v2076_v63 = vmul.f32 %v4802_v50, %v4127_v26  ;;  %v2044_v36 = vmul.f32 %v4784_v10, %v2043_v53 }
 0x15a   : > { %v4794_v13 = vmul.f32 %v2074_v45, %v1428_v33  ;;  %1682 = vmatmul.bf16.vlgmr.msrb.gmra.mxu2 %v3608_v19  ;;  %1721 = vmatmul.bf16.vlgmr.msrb.gmra.mxu3 %v3610_v20  ;;  %v2052_v45 = vmul.f32 0.5, %v2051_v43  ;;  %v2059_v14 = vmul.f32 %v5185_v57, %v5184_v0 }
 0x15b   : > { %v4829_v38 = vsel %vm2047_vm1, %v4784_v10, %v2044_v36  ;;  %v4840_v10 = vld [vmem:[%s5101_s3] sm:$0xf] }
 0x15c   : > { %v2053_v31 = vsub.f32 1.5, %v2052_v45 }
 0x15d   : > { %v1391_v9 = vpop.f32.mrf.mxu2 }
 0x15e   : > { %v1315_v27 = vpop.f32.mrf.mxu0  ;;  %v1430_v7 = vpop.f32.mrf.mxu3  ;;  %v1392_v24 = vadd.f32 %v1391_v9, %v1353_v37 }
 0x15f   : > { %v1316_v4 = vadd.f32 %v1315_v27, %v4401_v12  ;;  %v1354_v15 = vpop.f32.mrf.mxu1  ;;  %v2080_v27 = vmul.f32 %v4829_v38, %v4199_v28 }
 0x160   : > { %v1431_v20 = vadd.f32 %v1430_v7, %v1392_v24 }
 0x161   : > { %v1355_v19 = vadd.f32 %v1354_v15, %v1316_v4 }
 0x162   : > { %v4811_v46 = vmul.f32 %v2076_v63, %v1431_v20 }
 0x165   : > { %v1393_v21 = vpop.f32.mrf.mxu2 }
 0x166   : > { %v1318_v16 = vpop.f32.mrf.mxu0  ;;  %v1432_v26 = vpop.f32.mrf.mxu3  ;;  %v1394_v25 = vadd.f32 %v1393_v21, %v1355_v19 }
 0x167   : > { %v1319_v22 = vadd.f32 %v1318_v16, %v4401_v12  ;;  %v1357_v35 = vpop.f32.mrf.mxu1 }
 0x168   : > { %v1433_v8 = vadd.f32 %v1432_v26, %v1394_v25 }
 0x169   : > { %v1358_v62 = vadd.f32 %v1357_v35, %v1319_v22  ;;  %1609 = vmatmul.bf16.gmra.mxu0 %v3714_v32  ;;  %1648 = vmatmul.bf16.gmra.mxu1 %v3730_v39  ;;  %v5186_v22 = vld [vmem:[#allocation25_spill] sm:$0xff] }
 0x16a   : > { %v4822_v37 = vmul.f32 %v2078_v49, %v1433_v8  ;;  %1687 = vmatmul.bf16.gmra.mxu2 %v3741_v51  ;;  %1726 = vmatmul.bf16.gmra.mxu3 %v3743_v52  ;;  %v2054_v52 = vmul.f32 %v3156_v18, %v2053_v31  ;;  %v2083_v25 = vmul.f32 %v2059_v14, %v5186_v22  ;;  %v5187_v49 = vld [vmem:[#allocation18_spill] sm:$0xff] }
 0x16b   : > { %v2061_v35 = vmul.f32 %v4554_v30, %v5187_v49  ;;  %v5192_v30 = vld [vmem:[#allocation7_spill] sm:$0xff] }
 0x16c   : > { %v4845_v41 = vsel %vm2057_vm4, %v3156_v18, %v2054_v52  ;;  %v5183_v18 = vld [vmem:[#allocation3_spill] sm:$0xff]  ;;  %v5193_v52 = vld [vmem:[#allocation12_spill] sm:$0xff] }
 0x16d   : > { %v1396_v23 = vpop.f32.mrf.mxu2  ;;  %v2082_v4 = vmul.f32 %v4845_v41, %v4172_v40 }
 0x16e   : > { %v1320_v2 = vpop.f32.mrf.mxu0  ;;  %v1435_v33 = vpop.f32.mrf.mxu3  ;;  %v1397_v42 = vadd.f32 %v1396_v23, %v1358_v62 }
 0x16f   : > { %v1321_v29 = vadd.f32 %v1320_v2, %v4401_v12  ;;  %v1359_v32 = vpop.f32.mrf.mxu1  ;;  %v4843_v12 = vperm.slane %v4840_v10, 2 }
 0x170   : > { %v1436_v51 = vadd.f32 %v1435_v33, %v1397_v42  ;;  %v5188_v33 = vld [vmem:[#allocation26_spill] sm:$0xff] }
 0x171   : > { %v1360_v39 = vadd.f32 %v1359_v32, %v1321_v29  ;;  %v2085_v29 = vmul.f32 %v2061_v35, %v5188_v33  ;;  %v5189_v32 = vld [vmem:[#allocation4_spill] sm:$0xff] }
 0x172   : > { %v4835_v48 = vmul.f32 %v2080_v27, %v1436_v51  ;;  %v5191_v51 = vld [vmem:[#allocation6_spill] sm:$0xff] }
 0x175   : > { %v1398_v58 = vpop.f32.mrf.mxu2 }
 0x176   : > { %v1449_v28 = vpop.f32.mrf.mxu0  ;;  %v1437_v9 = vpop.f32.mrf.mxu3  ;;  %v1399_v7 = vadd.f32 %v1398_v58, %v1360_v39  ;;  %v5190_v39 = vld [vmem:[#allocation5_spill] sm:$0xff] }
 0x177   : > { %v1450_v24 = vadd.f32 %v1449_v28, %v4843_v12  ;;  %v1488_v63 = vpop.f32.mrf.mxu1  ;;  %v5194_v28 = vld [vmem:[#allocation40_spill] sm:$0xff] }
 0x178   : > { %v1438_v15 = vadd.f32 %v1437_v9, %v1399_v7  ;;  %v2063_v58 = vmul.f32 %v5194_v28, %v5193_v52 }
 0x179   : > { %v1489_v20 = vadd.f32 %v1488_v63, %v1450_v24  ;;  %1614 = vmatmul.bf16.gmra.mxu0 %v3799_v44  ;;  %1653 = vmatmul.bf16.gmra.mxu1 %v3804_v54 }
 0x17a   : > { %v4850_v19 = vmul.f32 %v2082_v4, %v1438_v15  ;;  %1692 = vmatmul.bf16.gmra.mxu2 %v3806_v55  ;;  %1731 = vmatmul.bf16.gmra.mxu3 %v5183_v18 }
 0x17d   : > { %v1527_v16 = vpop.f32.mrf.mxu2 }
 0x17e   : > { %v1451_v40 = vpop.f32.mrf.mxu0  ;;  %v1566_v43 = vpop.f32.mrf.mxu3  ;;  %v1528_v53 = vadd.f32 %v1527_v16, %v1489_v20  ;;  %v5195_v20 = vld [vmem:[#allocation27_spill] sm:$0xff]  ;;  %v5197_v16 = vld [vmem:[#allocation41_spill] sm:$0xff] }
 0x17f   : > { %v1490_v21 = vpop.f32.mrf.mxu1  ;;  %v1452_v44 = vadd.f32 %v1451_v40, %v4843_v12  ;;  %v2087_v18 = vmul.f32 %v2063_v58, %v5195_v20  ;;  %v5196_v40 = vld [vmem:[#allocation17_spill] sm:$0xff] }
 0x180   : > { %v1567_v26 = vadd.f32 %v1566_v43, %v1528_v53  ;;  %v2065_v43 = vmul.f32 %v5197_v16, %v5196_v40 }
 0x181   : > { %v1491_v55 = vadd.f32 %v1490_v21, %v1452_v44 }
 0x182   : > { %v2107_v54 = vadd.f32 %v2083_v25, %v1567_v26 }
 0x184   : > { %2131 = vst [vmem:[%s4861_s15] sm:$0xff] %v2107_v54 }
 0x185   : > { %v1529_v8 = vpop.f32.mrf.mxu2 }
 0x186   : > { %v1454_v62 = vpop.f32.mrf.mxu0  ;;  %v1568_v45 = vpop.f32.mrf.mxu3  ;;  %v1530_v36 = vadd.f32 %v1529_v8, %v1491_v55  ;;  %v5198_v55 = vld [vmem:[#allocation28_spill] sm:$0xff] }
 0x187   : > { %v1455_v2 = vadd.f32 %v1454_v62, %v4843_v12  ;;  %v1493_v31 = vpop.f32.mrf.mxu1  ;;  %v2089_v49 = vmul.f32 %v2065_v43, %v5198_v55  ;;  %v5199_v8 = vld [vmem:[#allocation8_spill] sm:$0xff]  ;;  %v5209_v55 = vld [vmem:[#allocation21_spill] sm:$0xff] }
 0x188   : > { %v1569_v23 = vadd.f32 %v1568_v45, %v1530_v36  ;;  %v5200_v45 = vld [vmem:[#allocation9_spill] sm:$0xff]  ;;  %v5201_v36 = vld [vmem:[#allocation10_spill] sm:$0xff] }
 0x189   : > { %v1494_v27 = vadd.f32 %v1493_v31, %v1455_v2  ;;  %1619 = vmatmul.bf16.gmra.mxu0 %v5189_v32  ;;  %1658 = vmatmul.bf16.gmra.mxu1 %v5190_v39  ;;  %v5202_v2 = vld [vmem:[#allocation11_spill] sm:$0xff] }
 0x18a   : > { %v2109_v42 = vadd.f32 %v2085_v29, %v1569_v23  ;;  %1697 = vmatmul.bf16.gmra.mxu2 %v5191_v51  ;;  %1736 = vmatmul.bf16.gmra.mxu3 %v5192_v30  ;;  %v5203_v31 = vld [vmem:[#allocation15_spill] sm:$0xff]  ;;  %v5204_v51 = vld [vmem:[#allocation29_spill] sm:$0xff] }
 0x18b   : > { %v2067_v23 = vmul.f32 %v4694_v56, %v5203_v31 }
 0x18c   : > { %2133 = vst [vmem:[%s4861_s15 + $0x10] sm:$0xff] %v2109_v42 }
 0x18d   : > { %v1532_v7 = vpop.f32.mrf.mxu2  ;;  %v2091_v30 = vmul.f32 %v2067_v23, %v5204_v51 }
 0x18e   : > { %v1456_v9 = vpop.f32.mrf.mxu0  ;;  %v1571_v4 = vpop.f32.mrf.mxu3  ;;  %v1533_v24 = vadd.f32 %v1532_v7, %v1494_v27 }
 0x18f   : > { %v1495_v63 = vpop.f32.mrf.mxu1  ;;  %v1457_v0 = vadd.f32 %v1456_v9, %v4843_v12  ;;  %v5205_v9 = vld [vmem:[#allocation16_spill] sm:$0xff] }
 0x190   : > { %v1572_v15 = vadd.f32 %v1571_v4, %v1533_v24  ;;  %v2069_v7 = vmul.f32 %v4707_v60, %v5205_v9  ;;  %v5207_v60 = vld [vmem:[#allocation20_spill] sm:$0xff] }
 0x191   : > { %v1496_v14 = vadd.f32 %v1495_v63, %v1457_v0  ;;  %v5206_v0 = vld [vmem:[#allocation30_spill] sm:$0xff]  ;;  %v2071_v16 = vmul.f32 %v4761_v1, %v5207_v60 }
 0x192   : > { %v2111_v57 = vadd.f32 %v2087_v18, %v1572_v15 }
 0x194   : > { %2135 = vst [vmem:[%s4861_s15 + $0x20] sm:$0xff] %v2111_v57  ;;  %v2093_v57 = vmul.f32 %v2069_v7, %v5206_v0  ;;  %v5214_v0 = vld [vmem:[#allocation34_spill] sm:$0xff] }
 0x195   : > { %v1534_v21 = vpop.f32.mrf.mxu2 }
 0x196   : > { %v1459_v53 = vpop.f32.mrf.mxu0  ;;  %v1573_v26 = vpop.f32.mrf.mxu3  ;;  %v1535_v22 = vadd.f32 %v1534_v21, %v1496_v14 }
 0x197   : > { %v1460_v25 = vadd.f32 %v1459_v53, %v4843_v12  ;;  %v1498_v44 = vpop.f32.mrf.mxu1 }
 0x198   : > { %v1574_v54 = vadd.f32 %v1573_v26, %v1535_v22 }
 0x199   : > { %v1499_v62 = vadd.f32 %v1498_v44, %v1460_v25  ;;  %1624 = vmatmul.bf16.gmra.mxu0 %v5199_v8  ;;  %1663 = vmatmul.bf16.gmra.mxu1 %v5200_v45  ;;  %v5208_v44 = vld [vmem:[#allocation31_spill] sm:$0xff] }
 0x19a   : > { %v2113_v35 = vadd.f32 %v2089_v49, %v1574_v54  ;;  %1702 = vmatmul.bf16.gmra.mxu2 %v5201_v36  ;;  %1741 = vmatmul.bf16.gmra.mxu3 %v5202_v2  ;;  %v2095_v54 = vmul.f32 %v2071_v16, %v5208_v44  ;;  %v5210_v2 = vld [vmem:[#allocation32_spill] sm:$0xff]  ;;  %v5216_v44 = vld [vmem:[#allocation35_spill] sm:$0xff] }
 0x19b   : > { %v5215_v16 = vld [vmem:[#allocation24_spill] sm:$0xff] }
 0x19c   : > { %2137 = vst [vmem:[%s4861_s15 + $0x30] sm:$0xff] %v2113_v35 }
 0x19d   : > { %v1537_v29 = vpop.f32.mrf.mxu2 }
 0x19e   : > { %v1461_v33 = vpop.f32.mrf.mxu0  ;;  %v1576_v42 = vpop.f32.mrf.mxu3  ;;  %v1538_v27 = vadd.f32 %v1537_v29, %v1499_v62  ;;  %v5211_v29 = vld [vmem:[#allocation19_spill] sm:$0xff] }
 0x19f   : > { %v1500_v32 = vpop.f32.mrf.mxu1  ;;  %v1462_v52 = vadd.f32 %v1461_v33, %v4843_v12 }
 0x1a0   : > { %v1577_v39 = vadd.f32 %v1576_v42, %v1538_v27  ;;  %v2075_v42 = vmul.f32 %v4802_v50, %v5211_v29 }
 0x1a1   : > { %v1501_v58 = vadd.f32 %v1500_v32, %v1462_v52  ;;  %v5212_v52 = vld [vmem:[#allocation33_spill] sm:$0xff] }
 0x1a2   : > { %v2115_v28 = vadd.f32 %v2091_v30, %v1577_v39 }
 0x1a4   : > { %2139 = vst [vmem:[%s4861_s15 + $0x40] sm:$0xff] %v2115_v28  ;;  %v2099_v28 = vmul.f32 %v2075_v42, %v5212_v52 }
 0x1a5   : > { %v1539_v24 = vpop.f32.mrf.mxu2 }
 0x1a6   : > { %v1464_v4 = vpop.f32.mrf.mxu0  ;;  %v1578_v56 = vpop.f32.mrf.mxu3  ;;  %v1540_v63 = vadd.f32 %v1539_v24, %v1501_v58 }
 0x1a7   : > { %v1465_v15 = vadd.f32 %v1464_v4, %v4843_v12  ;;  %v1503_v20 = vpop.f32.mrf.mxu1  ;;  %v5213_v4 = vld [vmem:[#allocation23_spill] sm:$0xff] }
 0x1a8   : > { %v1579_v18 = vadd.f32 %v1578_v56, %v1540_v63  ;;  %v2077_v24 = vmul.f32 %v4814_v11, %v5213_v4 }
 0x1a9   : > { %v1504_v40 = vadd.f32 %v1503_v20, %v1465_v15  ;;  %1629 = vmatmul.bf16.gmra.mxu0 %v3937_v34  ;;  %1668 = vmatmul.bf16.gmra.mxu1 %v3942_v3 }
 0x1aa   : > { %v2117_v14 = vadd.f32 %v2093_v57, %v1579_v18  ;;  %1707 = vmatmul.bf16.gmra.mxu2 %v3944_v5  ;;  %1746 = vmatmul.bf16.gmra.mxu3 %v3946_v6  ;;  %v2073_v6 = vmul.f32 %v4781_v17, %v5209_v55  ;;  %v2101_v57 = vmul.f32 %v2077_v24, %v5214_v0  ;;  %v5220_v24 = vld [vmem:[#allocation39_spill] sm:$0xff] }
 0x1ac   : > { %2141 = vst [vmem:[%s4861_s15 + $0x50] sm:$0xff] %v2117_v14  ;;  %v2097_v31 = vmul.f32 %v2073_v6, %v5210_v2  ;;  %v5217_v6 = vld [vmem:[#allocation22_spill] sm:$0xff] }
 0x1ad   : > { %v1542_v53 = vpop.f32.mrf.mxu2 }
 0x1ae   : > { %v1466_v43 = vpop.f32.mrf.mxu0  ;;  %v1581_v21 = vpop.f32.mrf.mxu3  ;;  %v1543_v26 = vadd.f32 %v1542_v53, %v1504_v40 }
 0x1af   : > { %v1505_v22 = vpop.f32.mrf.mxu1  ;;  %v1467_v34 = vadd.f32 %v1466_v43, %v4843_v12  ;;  %v2079_v43 = vmul.f32 %v4829_v38, %v5215_v16  ;;  %v2081_v38 = vmul.f32 %v4845_v41, %v5217_v6 }
 0x1b0   : > { %v1582_v25 = vadd.f32 %v1581_v21, %v1543_v26 }
 0x1b1   : > { %v1506_v5 = vadd.f32 %v1505_v22, %v1467_v34 }
 0x1b2   : > { %v2119_v3 = vadd.f32 %v2095_v54, %v1582_v25  ;;  %v2103_v54 = vmul.f32 %v2079_v43, %v5216_v44  ;;  %v5222_v44 = vld [vmem:[#allocation42_spill] sm:$0xff] }
 0x1b4   : > { %2143 = vst [vmem:[%s4861_s15 + $0x60] sm:$0xff] %v2119_v3 }
 0x1b5   : > { %v1544_v35 = vpop.f32.mrf.mxu2 }
 0x1b6   : > { %v1469_v49 = vpop.f32.mrf.mxu0  ;;  %v1583_v1 = vpop.f32.mrf.mxu3  ;;  %v1545_v62 = vadd.f32 %v1544_v35, %v1506_v5  ;;  %v4926_v5 = vperm.slane %v4840_v10, 3 }
 0x1b7   : > { %v1470_v8 = vadd.f32 %v1469_v49, %v4843_v12  ;;  %v1508_v45 = vpop.f32.mrf.mxu1 }
 0x1b8   : > { %v1584_v36 = vadd.f32 %v1583_v1, %v1545_v62 }
 0x1b9   : > { %v1509_v33 = vadd.f32 %v1508_v45, %v1470_v8 }
 0x1ba   : > { %v2121_v23 = vadd.f32 %v2097_v31, %v1584_v36 }
 0x1bc   : > { %2145 = vst [vmem:[%s4861_s15 + $0x70] sm:$0xff] %v2121_v23 }
 0x1bd   : > { %v1547_v32 = vpop.f32.mrf.mxu2 }
 0x1be   : > { %v1471_v27 = vpop.f32.mrf.mxu0  ;;  %v1586_v17 = vpop.f32.mrf.mxu3  ;;  %v1548_v39 = vadd.f32 %v1547_v32, %v1509_v33 }
 0x1bf   : > { %v1510_v51 = vpop.f32.mrf.mxu1  ;;  %v1472_v58 = vadd.f32 %v1471_v27, %v4843_v12 }
 0x1c0   : > { %v1587_v30 = vadd.f32 %v1586_v17, %v1548_v39  ;;  %v5219_v17 = vld [vmem:[#allocation38_spill] sm:$0xff] }
 0x1c1   : > { %v1511_v7 = vadd.f32 %v1510_v51, %v1472_v58 }
 0x1c2   : > { %v2123_v9 = vadd.f32 %v2099_v28, %v1587_v30 }
 0x1c4   : > { %2147 = vst [vmem:[%s4861_s15 + $0x80] sm:$0xff] %v2123_v9 }
 0x1c5   : > { %v1549_v56 = vpop.f32.mrf.mxu2 }
 0x1c6   : > { %v1588_v63 = vpop.f32.mrf.mxu3  ;;  %v1550_v50 = vadd.f32 %v1549_v56, %v1511_v7  ;;  %v1474_v15 = vpop.f32.mrf.mxu0 }
 0x1c7   : > { %v1513_v20 = vpop.f32.mrf.mxu1  ;;  %v1475_v14 = vadd.f32 %v1474_v15, %v4843_v12 }
 0x1c8   : > { %v1589_v18 = vadd.f32 %v1588_v63, %v1550_v50 }
 0x1c9   : > { %v1514_v60 = vadd.f32 %v1513_v20, %v1475_v14 }
 0x1ca   : > { %v2125_v40 = vadd.f32 %v2101_v57, %v1589_v18 }
 0x1cc   : > { %2149 = vst [vmem:[%s4861_s15 + $0x90] sm:$0xff] %v2125_v40  ;;  %v5221_v40 = vld [vmem:[#allocation13_spill] sm:$0xff] }
 0x1cd   : > { %v1552_v53 = vpop.f32.mrf.mxu2 }
 0x1ce   : > { %v1553_v21 = vadd.f32 %v1552_v53, %v1514_v60  ;;  %v1591_v11 = vpop.f32.mrf.mxu3  ;;  %v1476_v26 = vpop.f32.mrf.mxu0 }
 0x1cf   : > { %v1515_v22 = vpop.f32.mrf.mxu1  ;;  %v1477_v34 = vadd.f32 %v1476_v26, %v4843_v12  ;;  %v5218_v12 = vld [vmem:[#allocation36_spill] sm:$0xff] }
 0x1d0   : > { %v1592_v25 = vadd.f32 %v1591_v11, %v1553_v21  ;;  %v2105_v2 = vmul.f32 %v2081_v38, %v5218_v12 }
 0x1d1   : > { %v1516_v55 = vadd.f32 %v1515_v22, %v1477_v34 }
 0x1d2   : > { %v2127_v3 = vadd.f32 %v2103_v54, %v1592_v25 }
 0x1d4   : > { %2151 = vst [vmem:[%s4861_s15 + $0xa0] sm:$0xff] %v2127_v3 }
 0x1d5   : > { %v1554_v49 = vpop.f32.mrf.mxu2 }
 0x1d6   : > { %v1555_v35 = vadd.f32 %v1554_v49, %v1516_v55  ;;  %v1593_v1 = vpop.f32.mrf.mxu3  ;;  %v1605_v62 = vpop.f32.mrf.mxu0 }
 0x1d7   : > { %v1606_v8 = vadd.f32 %v1605_v62, %v4926_v5  ;;  %v1644_v45 = vpop.f32.mrf.mxu1 }
 0x1d8   : > { %v1594_v36 = vadd.f32 %v1593_v1, %v1555_v35 }
 0x1d9   : > { %v1645_v23 = vadd.f32 %v1644_v45, %v1606_v8 }
 0x1da   : > { %v2129_v31 = vadd.f32 %v2105_v2, %v1594_v36 }
 0x1dc   : > { %2153 = vst [vmem:[%s4861_s15 + $0xb0] sm:$0xff] %v2129_v31 }
 0x1dd   : > { %v1683_v10 = vpop.f32.mrf.mxu2 }
 0x1de   : > { %v1684_v33 = vadd.f32 %v1683_v10, %v1645_v23  ;;  %v1722_v29 = vpop.f32.mrf.mxu3  ;;  %v1607_v42 = vpop.f32.mrf.mxu0 }
 0x1df   : > { %v1646_v41 = vpop.f32.mrf.mxu1  ;;  %v1608_v32 = vadd.f32 %v1607_v42, %v4926_v5 }
 0x1e0   : > { %v1723_v27 = vadd.f32 %v1722_v29, %v1684_v33 }
 0x1e1   : > { %v1647_v51 = vadd.f32 %v1646_v41, %v1608_v32 }
 0x1e2   : > { %v2108_v39 = vadd.f32 %v5219_v17, %v1723_v27 }
 0x1e4   : > { %2132 = vst [vmem:[%s4861_s15 + $0x8] sm:$0xff] %v2108_v39 }
 0x1e5   : > { %v1685_v30 = vpop.f32.mrf.mxu2 }
 0x1e6   : > { %v1686_v52 = vadd.f32 %v1685_v30, %v1647_v51  ;;  %v1724_v28 = vpop.f32.mrf.mxu3  ;;  %v1610_v58 = vpop.f32.mrf.mxu0 }
 0x1e7   : > { %v1611_v9 = vadd.f32 %v1610_v58, %v4926_v5  ;;  %v1649_v7 = vpop.f32.mrf.mxu1 }
 0x1e8   : > { %v1725_v4 = vadd.f32 %v1724_v28, %v1686_v52 }
 0x1e9   : > { %v1650_v63 = vadd.f32 %v1649_v7, %v1611_v9 }
 0x1ea   : > { %v2110_v56 = vadd.f32 %v5220_v24, %v1725_v4 }
 0x1ec   : > { %2134 = vst [vmem:[%s4861_s15 + $0x18] sm:$0xff] %v2110_v56 }
 0x1ed   : > { %v1688_v50 = vpop.f32.mrf.mxu2 }
 0x1ee   : > { %v1689_v15 = vadd.f32 %v1688_v50, %v1650_v63  ;;  %v1727_v20 = vpop.f32.mrf.mxu3  ;;  %v1612_v18 = vpop.f32.mrf.mxu0 }
 0x1ef   : > { %v1651_v0 = vpop.f32.mrf.mxu1  ;;  %v1613_v14 = vadd.f32 %v1612_v18, %v4926_v5 }
 0x1f0   : > { %v1728_v57 = vadd.f32 %v1727_v20, %v1689_v15 }
 0x1f1   : > { %v1652_v16 = vadd.f32 %v1651_v0, %v1613_v14 }
 0x1f2   : > { %v2112_v60 = vadd.f32 %v5221_v40, %v1728_v57 }
 0x1f4   : > { %2136 = vst [vmem:[%s4861_s15 + $0x28] sm:$0xff] %v2112_v60 }
 0x1f5   : > { %v1690_v43 = vpop.f32.mrf.mxu2 }
 0x1f6   : > { %v1691_v53 = vadd.f32 %v1690_v43, %v1652_v16  ;;  %v1729_v21 = vpop.f32.mrf.mxu3  ;;  %v1615_v11 = vpop.f32.mrf.mxu0 }
 0x1f7   : > { %v1616_v26 = vadd.f32 %v1615_v11, %v4926_v5  ;;  %v1654_v22 = vpop.f32.mrf.mxu1 }
 0x1f8   : > { %v1730_v25 = vadd.f32 %v1729_v21, %v1691_v53 }
 0x1f9   : > { %v1655_v34 = vadd.f32 %v1654_v22, %v1616_v26 }
 0x1fa   : > { %v2114_v54 = vadd.f32 %v5222_v44, %v1730_v25 }
 0x1fc   : > { %2138 = vst [vmem:[%s4861_s15 + $0x38] sm:$0xff] %v2114_v54 }
 0x1fd   : > { %v1693_v3 = vpop.f32.mrf.mxu2 }
 0x1fe   : > { %v1694_v55 = vadd.f32 %v1693_v3, %v1655_v34  ;;  %v1732_v6 = vpop.f32.mrf.mxu3  ;;  %v1617_v38 = vpop.f32.mrf.mxu0 }
 0x1ff   : > { %v1656_v49 = vpop.f32.mrf.mxu1  ;;  %v1618_v1 = vadd.f32 %v1617_v38, %v4926_v5 }
 0x200   : > { %v1733_v35 = vadd.f32 %v1732_v6, %v1694_v55 }
 0x201   : > { %v1657_v8 = vadd.f32 %v1656_v49, %v1618_v1 }
 0x202   : > { %v2116_v62 = vadd.f32 %v4728_v59, %v1733_v35 }
 0x204   : > { %2140 = vst [vmem:[%s4861_s15 + $0x48] sm:$0xff] %v2116_v62 }
 0x205   : > { %v1695_v45 = vpop.f32.mrf.mxu2 }
 0x206   : > { %v1696_v36 = vadd.f32 %v1695_v45, %v1657_v8  ;;  %v1734_v12 = vpop.f32.mrf.mxu3  ;;  %v1620_v2 = vpop.f32.mrf.mxu0 }
 0x207   : > { %v1621_v31 = vadd.f32 %v1620_v2, %v4926_v5  ;;  %v1659_v23 = vpop.f32.mrf.mxu1 }
 0x208   : > { %v1735_v10 = vadd.f32 %v1734_v12, %v1696_v36 }
 0x209   : > { %v1660_v29 = vadd.f32 %v1659_v23, %v1621_v31 }
 0x20a   : > { %v2118_v33 = vadd.f32 %v4756_v47, %v1735_v10 }
 0x20c   : > { %2142 = vst [vmem:[%s4861_s15 + $0x58] sm:$0xff] %v2118_v33 }
 0x20d   : > { %v1698_v42 = vpop.f32.mrf.mxu2 }
 0x20e   : > { %v1699_v41 = vadd.f32 %v1698_v42, %v1660_v29  ;;  %v1737_v27 = vpop.f32.mrf.mxu3  ;;  %v1622_v32 = vpop.f32.mrf.mxu0 }
 0x20f   : > { %v1661_v59 = vpop.f32.mrf.mxu1  ;;  %v1623_v39 = vadd.f32 %v1622_v32, %v4926_v5 }
 0x210   : > { %v1738_v17 = vadd.f32 %v1737_v27, %v1699_v41 }
 0x211   : > { %v1662_v30 = vadd.f32 %v1661_v59, %v1623_v39 }
 0x212   : > { %v2120_v51 = vadd.f32 %v4775_v61, %v1738_v17 }
 0x214   : > { %2144 = vst [vmem:[%s4861_s15 + $0x68] sm:$0xff] %v2120_v51 }
 0x215   : > { %v1700_v52 = vpop.f32.mrf.mxu2 }
 0x216   : > { %v1701_v28 = vadd.f32 %v1700_v52, %v1662_v30  ;;  %v1739_v58 = vpop.f32.mrf.mxu3  ;;  %v1625_v47 = vpop.f32.mrf.mxu0 }
 0x217   : > { %v1626_v9 = vadd.f32 %v1625_v47, %v4926_v5  ;;  %v1664_v7 = vpop.f32.mrf.mxu1 }
 0x218   : > { %v1740_v4 = vadd.f32 %v1739_v58, %v1701_v28 }
 0x219   : > { %v1665_v56 = vadd.f32 %v1664_v7, %v1626_v9 }
 0x21a   : > { %v2122_v24 = vadd.f32 %v4794_v13, %v1740_v4 }
 0x21c   : > { %2146 = vst [vmem:[%s4861_s15 + $0x78] sm:$0xff] %v2122_v24 }
 0x21d   : > { %v1703_v63 = vpop.f32.mrf.mxu2 }
 0x21e   : > { %v1704_v50 = vadd.f32 %v1703_v63, %v1665_v56  ;;  %v1742_v15 = vpop.f32.mrf.mxu3  ;;  %v1627_v20 = vpop.f32.mrf.mxu0 }
 0x21f   : > { %v1666_v61 = vpop.f32.mrf.mxu1  ;;  %v1628_v0 = vadd.f32 %v1627_v20, %v4926_v5 }
 0x220   : > { %v1743_v18 = vadd.f32 %v1742_v15, %v1704_v50 }
 0x221   : > { %v1667_v14 = vadd.f32 %v1666_v61, %v1628_v0 }
 0x222   : > { %v2124_v57 = vadd.f32 %v4811_v46, %v1743_v18 }
 0x224   : > { %2148 = vst [vmem:[%s4861_s15 + $0x88] sm:$0xff] %v2124_v57 }
 0x225   : > { %v1705_v40 = vpop.f32.mrf.mxu2 }
 0x226   : > { %v1706_v60 = vadd.f32 %v1705_v40, %v1667_v14  ;;  %v1744_v16 = vpop.f32.mrf.mxu3  ;;  %v1630_v13 = vpop.f32.mrf.mxu0 }
 0x227   : > { %v1631_v43 = vadd.f32 %v1630_v13, %v4926_v5  ;;  %v1669_v21 = vpop.f32.mrf.mxu1 }
 0x228   : > { %v1745_v53 = vadd.f32 %v1744_v16, %v1706_v60 }
 0x229   : > { %v1670_v26 = vadd.f32 %v1669_v21, %v1631_v43 }
 0x22a   : > { %v2126_v11 = vadd.f32 %v4822_v37, %v1745_v53 }
 0x22c   : > { %2150 = vst [vmem:[%s4861_s15 + $0x98] sm:$0xff] %v2126_v11 }
 0x22d   : > { %v1708_v22 = vpop.f32.mrf.mxu2 }
 0x22e   : > { %v1709_v25 = vadd.f32 %v1708_v22, %v1670_v26  ;;  %v1747_v44 = vpop.f32.mrf.mxu3  ;;  %v1632_v46 = vpop.f32.mrf.mxu0 }
 0x22f   : > { %v1633_v34 = vadd.f32 %v1632_v46, %v4926_v5  ;;  %v1671_v55 = vpop.f32.mrf.mxu1 }
 0x230   : > { %v1748_v54 = vadd.f32 %v1747_v44, %v1709_v25 }
 0x231   : > { %v1672_v6 = vadd.f32 %v1671_v55, %v1633_v34 }
 0x232   : > { %v2128_v3 = vadd.f32 %v4835_v48, %v1748_v54 }
 0x234   : > { %2152 = vst [vmem:[%s4861_s15 + $0xa8] sm:$0xff] %v2128_v3 }
 0x235   : > { %v1710_v38 = vpop.f32.mrf.mxu2 }
 0x236   : > { %v1711_v49 = vadd.f32 %v1710_v38, %v1672_v6  ;;  %v1749_v35 = vpop.f32.mrf.mxu3 }
 0x238   : > { %v1750_v1 = vadd.f32 %v1749_v35, %v1711_v49  ;;  %2161 = sbr.rel (!%p3303_p4) target bundleno = 644 (0x284), region = 40 }
 0x23a   : > { %v2130_v37 = vadd.f32 %v4850_v19, %v1750_v1 }
 0x23c   : > { %2154 = vst [vmem:[%s4861_s15 + $0xb8] sm:$0xff] %v2130_v37 }
 0x23d   : > { %s5232_s8 = smov (!%p2164_p8, %s2163_s8), 12 }
 0x23e   : > { %s3036_s9 = sshll.u32 %s5232_s8, 4 }
 0x23f   : > { %p2897_p9 = scmp.eq.s32.totalorder %s3036_s9, 0 }
 0x240   : > { %3158 = sdivrem.u32 (!%p2897_p9), %s5232_s8, 12 }
 0x241   : > { %2174 = sbr.rel (%p2897_p9) target bundleno = 644 (0x284), region = 44 }
 0x249   : > { %s4982_s23 = spop.drf %3158 }
 0x24a   : > { %s3160_s29 = spop.drf %3158  ;;  %p2898_p10 = scmp.le.s32.totalorder %s4982_s23, 0 }
 0x24b   : > { %s5223_s18 = smov (!%p2898_p10), %s4976_s13  ;;  %s5224_s6 = smov (!%p2898_p10), %s4861_s15 }
 0x24c   : > { %2322 = sbr.rel (%p2898_p10) target bundleno = 618 (0x26a), region = 95  ;;  %s4991_s17 = smov (!%p2898_p10), 0  }
 0x24d   : > { %s4993_s14 = smov (!%p2898_p10), 0  }
 0x251 LB: >> { %v2188_v48 = vld [vmem:[%s3226_s6] sm:$0xff]  ;;  %v2190_v19 = vld [vmem:[%s3226_s6 + $0x10] sm:$0xff]  ;;  %s2236_s20 = sadd.s32 1, %s3230_s17  ;;  %v2212_v33 = vld [vmem:[%s3226_s6 + $0x8] sm:$0xff]  ;;  %s2182_s14 = sadd.s32 1, %s3234_s14   ;;  %s3234_s14 = sphi %s4993_s14, %s2182_s14   ;;  %s3230_s17 = sphi %s4991_s17, %s5227_s17   ;;  %s3226_s6 = sphi %s5224_s6, %s5226_s6   ;;  %s3222_s18 = sphi %s5223_s18, %s5225_s18  }
 0x252   : >> { %v2192_v5 = vld [vmem:[%s3226_s6 + $0x20] sm:$0xff]  ;;  %2189 = vst [vmem:[%s3222_s18] sm:$0xff] %v2188_v48  ;;  %v2194_v62 = vld [vmem:[%s3226_s6 + $0x30] sm:$0xff]  ;;  %p2237_p11 = scmp.ge.s32.totalorder %s2236_s20, %s4982_s23  ;;  %v2214_v29 = vld [vmem:[%s3226_s6 + $0x18] sm:$0xff]  ;;  %p2181_p12 = scmp.ge.s32.totalorder %s2182_s14, %s4982_s23 }
 0x253   : >> { %2191 = vst [vmem:[%s3222_s18 + $0x10] sm:$0xff] %v2190_v19  ;;  %v2196_v8 = vld [vmem:[%s3226_s6 + $0x40] sm:$0xff]  ;;  %v2198_v45 = vld [vmem:[%s3226_s6 + $0x50] sm:$0xff]  ;;  %v2216_v42 = vld [vmem:[%s3226_s6 + $0x28] sm:$0xff] }
 0x254   : >> { %2193 = vst [vmem:[%s3222_s18 + $0x20] sm:$0xff] %v2192_v5  ;;  %s5234_s20 = smov (%p2237_p11, %s2236_s20), 0  ;;  %v2200_v36 = vld [vmem:[%s3226_s6 + $0x60] sm:$0xff]  ;;  %v2202_v12 = vld [vmem:[%s3226_s6 + $0x70] sm:$0xff]  ;;  %v2218_v41 = vld [vmem:[%s3226_s6 + $0x38] sm:$0xff] }
 0x255   : >> { %2195 = vst [vmem:[%s3222_s18 + $0x30] sm:$0xff] %v2194_v62  ;;  %s2239_s21 = smul.u32 192, %s5234_s20  ;;  %v2204_v2 = vld [vmem:[%s3226_s6 + $0x80] sm:$0xff]  ;;  %v2206_v31 = vld [vmem:[%s3226_s6 + $0x90] sm:$0xff]  ;;  %v2220_v27 = vld [vmem:[%s3226_s6 + $0x48] sm:$0xff]  ;;  %s5227_s17 = smov %s5234_s20 }
 0x256   : >> { %2197 = vst [vmem:[%s3222_s18 + $0x40] sm:$0xff] %v2196_v8  ;;  %v2208_v23 = vld [vmem:[%s3226_s6 + $0xa0] sm:$0xff]  ;;  %v2210_v10 = vld [vmem:[%s3226_s6 + $0xb0] sm:$0xff]  ;;  %v2222_v32 = vld [vmem:[%s3226_s6 + $0x58] sm:$0xff] }
 0x257   : >> { %2199 = vst [vmem:[%s3222_s18 + $0x50] sm:$0xff] %v2198_v45  ;;  %s5027_s24 = scalar_lea.vmem %s4861_s15, %s2239_s21 [#allocation2]   ;;  %s5030_s25 = scalar_lea.vmem %s4976_s13, %s2239_s21   ;;  %v2224_v59 = vld [vmem:[%s3226_s6 + $0x68] sm:$0xff]  ;;  %v2226_v17 = vld [vmem:[%s3226_s6 + $0x78] sm:$0xff] }
 0x258   : >> { %2201 = vst [vmem:[%s3222_s18 + $0x60] sm:$0xff] %v2200_v36  ;;  %v2228_v39 = vld [vmem:[%s3226_s6 + $0x88] sm:$0xff]  ;;  %v2230_v51 = vld [vmem:[%s3226_s6 + $0x98] sm:$0xff] }
 0x259   : >> { %2203 = vst [vmem:[%s3222_s18 + $0x70] sm:$0xff] %v2202_v12  ;;  %v2232_v30 = vld [vmem:[%s3226_s6 + $0xa8] sm:$0xff]  ;;  %v2234_v52 = vld [vmem:[%s3226_s6 + $0xb8] sm:$0xff]  ;;  %s5226_s6 = smov %s5027_s24 }
 0x25a   : >> { %2205 = vst [vmem:[%s3222_s18 + $0x80] sm:$0xff] %v2204_v2 }
 0x25b   : >> { %2207 = vst [vmem:[%s3222_s18 + $0x90] sm:$0xff] %v2206_v31 }
 0x25c   : >> { %2209 = vst [vmem:[%s3222_s18 + $0xa0] sm:$0xff] %v2208_v23 }
 0x25d   : >> { %2211 = vst [vmem:[%s3222_s18 + $0xb0] sm:$0xff] %v2210_v10 }
 0x25e   : >> { %2213 = vst [vmem:[%s3222_s18 + $0x8] sm:$0xff] %v2212_v33 }
 0x25f   : >> { %2215 = vst [vmem:[%s3222_s18 + $0x18] sm:$0xff] %v2214_v29 }
 0x260   : >> { %2217 = vst [vmem:[%s3222_s18 + $0x28] sm:$0xff] %v2216_v42 }
 0x261   : >> { %2219 = vst [vmem:[%s3222_s18 + $0x38] sm:$0xff] %v2218_v41 }
 0x262   : >> { %2221 = vst [vmem:[%s3222_s18 + $0x48] sm:$0xff] %v2220_v27 }
 0x263   : >> { %2223 = vst [vmem:[%s3222_s18 + $0x58] sm:$0xff] %v2222_v32 }
 0x264   : >> { %2225 = vst [vmem:[%s3222_s18 + $0x68] sm:$0xff] %v2224_v59 }
 0x265   : >> { %2227 = vst [vmem:[%s3222_s18 + $0x78] sm:$0xff] %v2226_v17  ;;  %2184 = sbr.rel (!%p2181_p12) target bundleno = 593 (0x251), region = 101 }
 0x266   : >> { %2229 = vst [vmem:[%s3222_s18 + $0x88] sm:$0xff] %v2228_v39 }
 0x267   : >> { %2231 = vst [vmem:[%s3222_s18 + $0x98] sm:$0xff] %v2230_v51 }
 0x268   : >> { %2233 = vst [vmem:[%s3222_s18 + $0xa8] sm:$0xff] %v2232_v30 }
 0x269   : >> { %2235 = vst [vmem:[%s3222_s18 + $0xb8] sm:$0xff] %v2234_v52  ;;  %s5225_s18 = smov %s5030_s25 }
 0x26a PF: > { %3161 = sdivrem.u32 %s5232_s8, 12 }
 0x26b   : > { %s2899_s26 = smul.u32 192, %s4982_s23 }
 0x26d   : > { %s5079_s27 = scalar_lea.vmem %s4861_s15, %s2899_s26 [#allocation2]   ;;  %s5082_s30 = scalar_lea.vmem %s4976_s13, %s2899_s26  }
 0x273   : > { %s3162_s5 = spop.drf %3161 }
 0x274   : > { %s3163_s7 = spop.drf %3161 }
 0x275   : > { %p2901_p13 = scmp.le.s32.totalorder %s3163_s7, 0 }
 0x276   : > { %s3236_s28 = smov (!%p2901_p13), %s5082_s30   ;;  %s3240_s10 = smov (!%p2901_p13), %s5079_s27  }
 0x277   : > { %2336 = sbr.rel (%p2901_p13) target bundleno = 644 (0x284), region = 106  ;;  %s3244_s11 = smov (!%p2901_p13), 0  }
 0x278   : > { %s3248_s12 = smov (!%p2901_p13), 0  }
 0x27c LB: >> { %v2259_v28 = vld [vmem:[%s3242_s10] sm:$0xff]  ;;  %v2261_v58 = vld [vmem:[%s3242_s10 + $0x8] sm:$0xff]  ;;  %s2263_s15 = sadd.s32 1, %s3246_s11  ;;  %s2253_s12 = sadd.s32 1, %s3250_s12   ;;  %s3250_s12 = sphi %s3248_s12, %s2253_s12   ;;  %s3246_s11 = sphi %s3244_s11, %s3245_s11   ;;  %s3242_s10 = sphi %s3240_s10, %s2268_s10   ;;  %s3238_s28 = sphi %s3236_s28, %s2269_s28  }
 0x27d   : >> { %2260 = vst [vmem:[%s3238_s28] sm:$0xff] %v2259_v28  ;;  %p2264_p0 = scmp.ge.s32.totalorder %s2263_s15, %s3163_s7  ;;  %p2252_p1 = scmp.ge.s32.totalorder %s2253_s12, %s3163_s7 }
 0x27e   : >> { %2262 = vst [vmem:[%s3238_s28 + $0x8] sm:$0xff] %v2261_v58 }
 0x27f   : >> { %s5236_s15 = smov (%p2264_p0, %s2263_s15), 0  ;;  %2255 = sbr.rel (!%p2252_p1) target bundleno = 636 (0x27c), region = 112 }
 0x280   : >> { %s2902_s8 = sshll.u32 %s5236_s15, 4  ;;  %s3245_s11 = smov %s5236_s15  }
 0x281   : >> { %s2268_s10 = scalar_lea.vmem %s5079_s27, %s2902_s8 [#allocation2]   ;;  %s2269_s28 = scalar_lea.vmem %s5082_s30, %s2902_s8  }
 0x284 PF: > { %p11_p2 = scmp.ge.s32.totalorder %s3293_s19, 5   ;;  %s5228_s15 = smov %s3214_s16 }
 0x285   : > { %s5229_s16 = smov %s3301_s22  ;;  %s5230_s17 = smov %s3293_s19 }
 0x286   :  { %13 = sbr.rel (!%p11_p2) target bundleno = 2 (0x2), region = 123 }

</bundles_post_ra>
